<compile_context>
chip_gen: v6e
topology: v6e:2x2x1
jax: 0.10.0
libtpu: 0.0.40
codegen_flags: <defaults>
</compile_context>

<pallas_src>
import jax
import jax.numpy as jnp
from jax.experimental import pallas as pl
from jax.experimental.pallas import tpu as pltpu

NOISE_FEATURE = 30
HIDDEN = 1024
OUT = 28 * 28  # 784


def _round_up(x, m):
    return (x + m - 1) // m * m


def generator_kernel(x_ref, w1_ref, b1_ref, w2_ref, b2_ref, o_ref):
    # fc1 + leaky_relu(0.2): bf16 MXU operands, f32 accumulation + epilogue.
    x = x_ref[...].astype(w1_ref.dtype)
    h = jnp.dot(x, w1_ref[...], preferred_element_type=jnp.float32)
    h = h + b1_ref[...]                      # (tile_b, 1024) + (1, 1024)
    h = jnp.maximum(h, 0.2 * h)              # leaky_relu, slope 0.2

    # fc2 + sigmoid.
    z = jnp.dot(h.astype(w2_ref.dtype), w2_ref[...],
                preferred_element_type=jnp.float32)
    z = z + b2_ref[...]                      # (tile_b, 784) + (1, 784)
    # sigmoid(z) == 0.5*tanh(0.5*z) + 0.5: one EUP transcendental per element
    # (vs. exp + reciprocal), and the result is exactly bounded to [0, 1].
    o_ref[...] = (0.5 * jnp.tanh(0.5 * z) + 0.5).astype(o_ref.dtype)


def prepare_params(w1, b1, w2, b2, *, use_bf16=True):
    """One-time parameter preparation (call once, NOT per forward):
    reshape biases to (1, N) f32 and cast matmul weights to bf16 for the MXU.
    """
    b1 = jnp.asarray(b1, jnp.float32).reshape(1, HIDDEN)
    b2 = jnp.asarray(b2, jnp.float32).reshape(1, OUT)
    wdt = jnp.bfloat16 if use_bf16 else jnp.float32
    w1 = jnp.asarray(w1, wdt)
    w2 = jnp.asarray(w2, wdt)
    return w1, b1, w2, b2


def _pick_tiling(batch, max_tile_b):
    """Balanced batch tiles, 8-row aligned, with an even number (>=2) of grid
    steps whenever there is at least one vreg-row of work per step (so the
    `parallel` grid axis keeps both v7x TensorCores busy; harmless on 1-TC
    v5e/v6e)."""
    steps = pl.cdiv(batch, max_tile_b)
    if batch >= 16:
        if steps < 2:
            steps = 2
        elif steps % 2:
            steps += 1
    tile_b = _round_up(pl.cdiv(batch, steps), 8)
    return tile_b, steps


def generator_forward(x, w1, b1, w2, b2, *, max_tile_b=512):
    """generator.forward.

    x : (B, 30) float32
    w1: (30, 1024)  == torch fc1.weight.T (bf16 or f32, via prepare_params)
    b1: (1, 1024) float32
    w2: (1024, 784) == torch fc2.weight.T (bf16 or f32)
    b2: (1, 784) float32
    Returns (B, 784) float32.
    """
    B = x.shape[0]
    tile_b, steps = _pick_tiling(B, max_tile_b)
    B_pad = tile_b * steps
    if B_pad != B:
        x = jnp.pad(x, ((0, B_pad - B), (0, 0)))

    out = pl.pallas_call(
        generator_kernel,
        out_shape=jax.ShapeDtypeStruct((B_pad, OUT), jnp.float32),
        grid_spec=pltpu.PrefetchScalarGridSpec(
            num_scalar_prefetch=0,
            grid=(steps,),
            in_specs=[
                # per-step batch tile of the input noise
                pl.BlockSpec((tile_b, NOISE_FEATURE), lambda i: (i, 0)),
                # grid-invariant (VMEM-resident) weights / biases
                pl.BlockSpec((NOISE_FEATURE, HIDDEN), lambda i: (0, 0)),
                pl.BlockSpec((1, HIDDEN), lambda i: (0, 0)),
                pl.BlockSpec((HIDDEN, OUT), lambda i: (0, 0)),
                pl.BlockSpec((1, OUT), lambda i: (0, 0)),
            ],
            out_specs=pl.BlockSpec((tile_b, OUT), lambda i: (i, 0)),
        ),
        compiler_params=pltpu.CompilerParams(
            dimension_semantics=("parallel",),
        ),
    )(x, w1, b1, w2, b2)

    return out if B_pad == B else out[:B]


if __name__ == "__main__":
    key = jax.random.PRNGKey(0)
    kx, kp = jax.random.split(key)

    B = 16  # small test batch -> 2 grid steps of 8 rows
    x = jax.random.normal(kx, (B, NOISE_FEATURE), jnp.float32)

    # Deterministic synthetic parameters matching the PyTorch module shapes.
    # PyTorch nn.Linear default init: U(-1/sqrt(fan_in), 1/sqrt(fan_in));
    # stored as (in, out) == torch weight.T.
    k1, k2, k3, k4 = jax.random.split(kp, 4)
    s1 = 1.0 / jnp.sqrt(NOISE_FEATURE)
    s2 = 1.0 / jnp.sqrt(HIDDEN)
    w1 = jax.random.uniform(k1, (NOISE_FEATURE, HIDDEN), jnp.float32, -s1, s1)
    b1 = jax.random.uniform(k2, (HIDDEN,), jnp.float32, -s1, s1)
    w2 = jax.random.uniform(k3, (HIDDEN, OUT), jnp.float32, -s2, s2)
    b2 = jax.random.uniform(k4, (OUT,), jnp.float32, -s2, s2)

    # One-time weight prep (hoisted out of the per-call forward path).
    pw1, pb1, pw2, pb2 = prepare_params(w1, b1, w2, b2, use_bf16=True)

    fwd = jax.jit(generator_forward)
    out = jax.block_until_ready(fwd(x, pw1, pb1, pw2, pb2))

    # Pure-JAX f32 reference. Kernel uses bf16 MXU operands, so the tolerance
    # is loosened accordingly (use_bf16=False restores closer parity).
    h_ref = x @ w1 + b1
    h_ref = jnp.where(h_ref >= 0, h_ref, 0.2 * h_ref)
    ref = jax.nn.sigmoid(h_ref @ w2 + b2)

    assert out.shape == (B, OUT), out.shape
    err = float(jnp.max(jnp.abs(out - ref)))
    assert err < 2e-2, f"max abs err {err}"

    print("KERNEL_OK")
</pallas_src>

<mosaic_0001>
module attributes {stable_mosaic.version = 11 : i64} {
  func.func @generator_kernel(%arg0: i32, %arg1: memref<8x30xf32, #tpu.memory_space<vmem>>, %arg2: memref<30x1024xbf16, #tpu.memory_space<vmem>>, %arg3: memref<1x1024xf32, #tpu.memory_space<vmem>>, %arg4: memref<1024x784xbf16, #tpu.memory_space<vmem>>, %arg5: memref<1x784xf32, #tpu.memory_space<vmem>>, %arg6: memref<8x784xf32, #tpu.memory_space<vmem>>) attributes {dimension_semantics = [#tpu.dimension_semantics<parallel>], iteration_bounds = array<i64: 2>, scalar_prefetch = 0 : i64, scratch_operands = 0 : i64, tpu.core_type = #tpu.core_type<tc>, window_params = [{transform_indices = @transform_0, window_bounds = array<i64: 8, 30>}, {pipeline_mode = #tpu.pipeline_mode<synchronous>, transform_indices = @transform_1, window_bounds = array<i64: 30, 1024>}, {pipeline_mode = #tpu.pipeline_mode<synchronous>, transform_indices = @transform_2, window_bounds = array<i64: 1, 1024>}, {pipeline_mode = #tpu.pipeline_mode<synchronous>, transform_indices = @transform_3, window_bounds = array<i64: 1024, 784>}, {pipeline_mode = #tpu.pipeline_mode<synchronous>, transform_indices = @transform_4, window_bounds = array<i64: 1, 784>}, {transform_indices = @transform_5, window_bounds = array<i64: 8, 784>}]} {
    %c0 = arith.constant 0 : index
    %c0_0 = arith.constant 0 : index
    %0 = vector.load %arg1[%c0, %c0_0] : memref<8x30xf32, #tpu.memory_space<vmem>>, vector<8x30xf32>
    %1 = arith.truncf %0 : vector<8x30xf32> to vector<8x30xbf16>
    %c0_1 = arith.constant 0 : index
    %c0_2 = arith.constant 0 : index
    %2 = vector.load %arg2[%c0_1, %c0_2] : memref<30x1024xbf16, #tpu.memory_space<vmem>>, vector<30x1024xbf16>
    %cst = arith.constant dense<0.000000e+00> : vector<8x1024xf32>
    %3 = tpu.matmul %1, %2, %cst {dimension_numbers = #tpu.dot_dimension_numbers<[1], [0], [0], [1], [0, 0, 1, 1], [], []>} : vector<8x30xbf16>, vector<30x1024xbf16>, vector<8x1024xf32> -> vector<8x1024xf32>
    %c0_3 = arith.constant 0 : index
    %c0_4 = arith.constant 0 : index
    %4 = vector.load %arg3[%c0_3, %c0_4] : memref<1x1024xf32, #tpu.memory_space<vmem>>, vector<1x1024xf32>
    %5 = vector.broadcast %4 : vector<1x1024xf32> to vector<8x1024xf32>
    %6 = arith.addf %3, %5 : vector<8x1024xf32>
    %cst_5 = arith.constant 2.000000e-01 : f32
    %7 = vector.broadcast %cst_5 : f32 to vector<8x1024xf32>
    %8 = arith.mulf %7, %6 : vector<8x1024xf32>
    %9 = arith.maximumf %6, %8 : vector<8x1024xf32>
    %10 = arith.truncf %9 : vector<8x1024xf32> to vector<8x1024xbf16>
    %c0_6 = arith.constant 0 : index
    %c0_7 = arith.constant 0 : index
    %11 = vector.load %arg4[%c0_6, %c0_7] : memref<1024x784xbf16, #tpu.memory_space<vmem>>, vector<1024x784xbf16>
    %cst_8 = arith.constant dense<0.000000e+00> : vector<8x784xf32>
    %12 = tpu.matmul %10, %11, %cst_8 {dimension_numbers = #tpu.dot_dimension_numbers<[1], [0], [0], [1], [0, 0, 1, 1], [], []>} : vector<8x1024xbf16>, vector<1024x784xbf16>, vector<8x784xf32> -> vector<8x784xf32>
    %c0_9 = arith.constant 0 : index
    %c0_10 = arith.constant 0 : index
    %13 = vector.load %arg5[%c0_9, %c0_10] : memref<1x784xf32, #tpu.memory_space<vmem>>, vector<1x784xf32>
    %14 = vector.broadcast %13 : vector<1x784xf32> to vector<8x784xf32>
    %15 = arith.addf %12, %14 : vector<8x784xf32>
    %cst_11 = arith.constant 5.000000e-01 : f32
    %16 = vector.broadcast %cst_11 : f32 to vector<8x784xf32>
    %17 = arith.mulf %16, %15 : vector<8x784xf32>
    %18 = math.tanh %17 : vector<8x784xf32>
    %cst_12 = arith.constant 5.000000e-01 : f32
    %19 = vector.broadcast %cst_12 : f32 to vector<8x784xf32>
    %20 = arith.mulf %19, %18 : vector<8x784xf32>
    %cst_13 = arith.constant 5.000000e-01 : f32
    %21 = vector.broadcast %cst_13 : f32 to vector<8x784xf32>
    %22 = arith.addf %20, %21 : vector<8x784xf32>
    %c0_14 = arith.constant 0 : index
    %c0_15 = arith.constant 0 : index
    %23 = vector.load %arg6[%c0_14, %c0_15] : memref<8x784xf32, #tpu.memory_space<vmem>>, vector<8x784xf32>
    tpu.vector_store %arg6[%c0_14, %c0_15], %22 {strides = array<i32>} : memref<8x784xf32, #tpu.memory_space<vmem>>, vector<8x784xf32>,
    return
  }
  func.func @transform_0(%arg0: i32) -> (i32, i32) {
    %c0_i32 = arith.constant 0 : i32
    %c0_i32_0 = arith.constant 0 : i32
    return %arg0, %c0_i32 : i32, i32
  }
  func.func @transform_1(%arg0: i32) -> (i32, i32) {
    %c0_i32 = arith.constant 0 : i32
    %c0_i32_0 = arith.constant 0 : i32
    %c0_i32_1 = arith.constant 0 : i32
    return %c0_i32, %c0_i32_0 : i32, i32
  }
  func.func @transform_2(%arg0: i32) -> (i32, i32) {
    %c0_i32 = arith.constant 0 : i32
    %c0_i32_0 = arith.constant 0 : i32
    %c0_i32_1 = arith.constant 0 : i32
    return %c0_i32, %c0_i32_0 : i32, i32
  }
  func.func @transform_3(%arg0: i32) -> (i32, i32) {
    %c0_i32 = arith.constant 0 : i32
    %c0_i32_0 = arith.constant 0 : i32
    %c0_i32_1 = arith.constant 0 : i32
    return %c0_i32, %c0_i32_0 : i32, i32
  }
  func.func @transform_4(%arg0: i32) -> (i32, i32) {
    %c0_i32 = arith.constant 0 : i32
    %c0_i32_0 = arith.constant 0 : i32
    %c0_i32_1 = arith.constant 0 : i32
    return %c0_i32, %c0_i32_0 : i32, i32
  }
  func.func @transform_5(%arg0: i32) -> (i32, i32) {
    %c0_i32 = arith.constant 0 : i32
    %c0_i32_0 = arith.constant 0 : i32
    return %arg0, %c0_i32 : i32, i32
  }
}

</mosaic_0001>

<bundles_post_ra>
// kernel: generator_forward.1
= control target key start
LH: loop header
LB: loop body
LE: loop exit
PB: predicated region body
PF: predicated region fallthrough
CT: control target
= control target key end

     0   :  { %10 = vsyncpa [#allocation3], 0  ;;  %s7189_s0 = inlined_call_operand.vmem [shape: f32[16,30], index: 0, kind: input, shape index: {}]   ;;  %s7190_s1 = inlined_call_operand.vmem [shape: bf16[30,1024], index: 1, kind: input, shape index: {}]   ;;  %s7191_s2 = inlined_call_operand.vmem [shape: f32[1,1024], index: 2, kind: input, shape index: {}]   ;;  %s7192_s3 = inlined_call_operand.vmem [shape: bf16[1024,784], index: 3, kind: input, shape index: {}]   ;;  %s7193_s4 = inlined_call_operand.vmem [shape: f32[1,784], index: 4, kind: input, shape index: {}]   ;;  %s7194_s5 = inlined_call_operand.hbm [shape: f32[16,784], index: 5, kind: output, shape index: {}]  }
   0x1   :  { %12 = vsyncpa [#allocation3 + $0x1], 0  ;;  %s5543_s18 = smov 0   ;;  %s5545_s19 = smov 0  }
   0x2   :  { %s5547_s20 = smov 0   ;;  %s5549_s21 = smov 0  }
   0x3 LB: > { %s5564_s22 = sadd.s32 4294967295, %s5509_s21   ;;  %s4185_s23 = sadd.s32 4294967294, %s5509_s21   ;;  %s5509_s21 = sphi %s5549_s21, %s7200_s21   ;;  %s5505_s20 = sphi %s5547_s20, %s7199_s20   ;;  %s5501_s19 = sphi %s5545_s19, %s7198_s19   ;;  %s5497_s18 = sphi %s5543_s18, %s7197_s18  }
   0x4   : > { %s5568_s24 = sadd.s32 1, %s5509_s21   ;;  %s135_s25 = sadd.s32 1, %s5505_s20 }
   0x5   : > { %s132_s26 = ssub.s32 %s5509_s21, %s5568_s24  ;;  %p145_p0 = scmp.ne.s32.totalorder %s5505_s20, %s5501_s19 }
   0x6   : > { %p133_p1 = scmp.eq.s32.totalorder %s132_s26, 0  ;;  %p146_p2 = scmp.eq.s32.totalorder %s5564_s22, 1 }
   0x7   : > { %p151_p3 = scmp.ne.s32.totalorder %s5501_s19, %s5497_s18  ;;  %p152_p4 = scmp.eq.s32.totalorder %s4185_s23, 1 }
   0x8   : > { %s5579_s27 = scalar_select %p133_p1, %s5505_s20, %s135_s25  }
   0x9   : > { %p5581_p5 = por %p146_p2, %p145_p0  ;;  %p5585_p6 = por %p152_p4, %p151_p3 }
   0xa   : > { %p4188_p7 = scmp.ge.s32.totalorder %s5509_s21, 1  ;;  %p189_p8 = scmp.lt.s32.totalorder %s5509_s21, 3 }
   0xc   : > { %p190_p9 = pnand %p4188_p7, %p189_p8 }
   0xd   : > { %p216_p10 = scmp.lt.s32.totalorder (!%p190_p9), %s5564_s22, 1  ;;  %s4754_s15 = smul.u32 (!%p190_p9), 896, %s5564_s22 }
   0xe   : > { %193 = sbr.rel (%p190_p9) target bundleno = 853 (0x355), region = 40  ;;  %s5512_s30 = smov (!%p190_p9), [#allocation2]  }
  0x13   : > { %v231_v0 = vld [vmem:[%s7190_s1 + $0x40] sm:$0xff]  ;;  %vm357_vm0 = vcmask 1046528   ;;  %v232_v2 = vld [vmem:[%s7190_s1 + $0x48] sm:$0xff]  ;;  %v5511_v8 = vmov 0   ;;  %v233_v14 = vld [vmem:[%s7190_s1 + $0x50] sm:$0xff]  ;;  %s217_s7 = scalar_select %p216_p10, %s5564_s22, 1 }
  0x14   : > { %v235_v1 = vld [vmem:[%s7190_s1 + $0x60] sm:$0x77]  ;;  %v236_v4 = vld [vmem:[%s7190_s1 + $0x68] sm:$0x77]  ;;  %414 = vmatprep.mubr.bf16.mxu0 %v5511_v8  ;;  %455 = vmatprep.mubr.bf16.mxu1 %v5511_v8  ;;  %v237_v17 = vld [vmem:[%s7190_s1 + $0x70] sm:$0x77] }
  0x15   : > { %v4199_v3 = vcombine.high %v231_v0, %v235_v1  ;;  %v4198_v5 = vcombine.low %v231_v0, %v235_v1  ;;  %v223_v6 = vld [vmem:[%s7190_s1] sm:$0xff]  ;;  %v4201_v9 = vcombine.high %v232_v2, %v236_v4  ;;  %v4200_v10 = vcombine.low %v232_v2, %v236_v4  ;;  %v224_v12 = vld [vmem:[%s7190_s1 + $0x8] sm:$0xff]  ;;  %v234_v18 = vld [vmem:[%s7190_s1 + $0x58] sm:$0xff]  ;;  %s4189_s14 = sshll.u32 %s217_s7, 3  ;;  %s213_s7 = sand.u32 1, %s5501_s19  }
  0x16   : > { %v227_v7 = vld [vmem:[%s7190_s1 + $0x20] sm:$0xff]  ;;  %v228_v13 = vld [vmem:[%s7190_s1 + $0x28] sm:$0xff]  ;;  %v238_v21 = vld [vmem:[%s7190_s1 + $0x78] sm:$0x77]  ;;  %v4203_v23 = vcombine.high %v233_v14, %v237_v17  ;;  %v4202_v24 = vcombine.low %v233_v14, %v237_v17  ;;  %s219_s25 = scalar_lea.vmem %s7189_s0, %s4189_s14  ;;  %vm353_vm1 = vcmask 244736   ;;  %s4753_s13 = smul.u32 56, %s213_s7 }
  0x17   : > { %v4191_v11 = vcombine.high %v223_v6, %v227_v7  ;;  %4206 = vmatprep.subr.msk.bf16.mxu0 %vm357_vm0, %v4199_v3  ;;  %v359_v15 = vsel %vm357_vm0, %v4198_v5, 0  ;;  %v4193_v16 = vcombine.high %v224_v12, %v228_v13  ;;  %4208 = vmatprep.subr.msk.bf16.mxu1 %vm357_vm0, %v4201_v9  ;;  %v365_v19 = vsel %vm357_vm0, %v4200_v10, 0  ;;  %v225_v25 = vld [vmem:[%s7190_s1 + $0x10] sm:$0xff]  ;;  %v226_v29 = vld [vmem:[%s7190_s1 + $0x18] sm:$0xff]  ;;  %v221_v30 = vld [vmem:[%s219_s25] sm:$0xff]  ;;  %s4124_s25 = scalar_lea.hbm %s7194_s5, %s4754_s15  ;;  %s4112_s26 = scalar_lea.sflag [#allocation3], %s213_s7 }
  0x18   : > { %395 = vmatpush1.bf16.msra.mxu0 %v359_v15  ;;  %v4190_v20 = vcombine.low %v223_v6, %v227_v7  ;;  %436 = vmatpush1.bf16.msra.mxu1 %v365_v19  ;;  %v4192_v22 = vcombine.low %v224_v12, %v228_v13  ;;  %v4205_v26 = vcombine.high %v234_v18, %v238_v21  ;;  %v229_v28 = vld [vmem:[%s7190_s1 + $0x30] sm:$0xff]  ;;  %v230_v31 = vld [vmem:[%s7190_s1 + $0x38] sm:$0xff]  ;;  %v371_v33 = vsel %vm357_vm0, %v4202_v24, 0  ;;  %v4797_v39 = vld [vmem:[%s7192_s3 + $0x18c] ss:$28 sps:$4 sm:$0xff]   ;;  %s6813_s14 = scalar_lea.vmem [#allocation2], %s4753_s13 }
  0x19   : > { %396 = vmatprep.subr.bf16.mxu0 %v4191_v11  ;;  %437 = vmatprep.subr.bf16.mxu1 %v4193_v16  ;;  %v4204_v27 = vcombine.low %v234_v18, %v238_v21  ;;  %v222_v32 = vpack.c.bf16 %v221_v30, %v221_v30  ;;  %v4195_v34 = vcombine.high %v225_v25, %v229_v28  ;;  %v4800_v40 = vld [vmem:[%s7192_s3 + $0x50c] ss:$28 sps:$4 sm:$0xff]   ;;  %v4803_v43 = vld [vmem:[%s7192_s3 + $0x154] ss:$28 sps:$4 sm:$0xff]   ;;  %v4809_v47 = vld [vmem:[%s7192_s3 + $0x11c] ss:$28 sps:$4 sm:$0xff]  }
  0x1a   : > { %v4197_v36 = vcombine.high %v226_v29, %v230_v31  ;;  %v4194_v37 = vcombine.low %v225_v25, %v229_v28  ;;  %v4196_v38 = vcombine.low %v226_v29, %v230_v31  ;;  %v4795_v41 = vld [vmem:[%s7192_s3 + $0x188] ss:$28 sps:$4 sm:$0xff]   ;;  %v4806_v44 = vld [vmem:[%s7192_s3 + $0x4d4] ss:$28 sps:$4 sm:$0xff]   ;;  %v4812_v48 = vld [vmem:[%s7192_s3 + $0x49c] ss:$28 sps:$4 sm:$0xff]  }
  0x1b   : > { %v377_v35 = vsel %vm357_vm0, %v4204_v27, 0  ;;  %v4798_v42 = vld [vmem:[%s7192_s3 + $0x508] ss:$28 sps:$4 sm:$0xff]   ;;  %v4801_v45 = vld [vmem:[%s7192_s3 + $0x150] ss:$28 sps:$4 sm:$0xff]   ;;  %s4126_s16 = sshll.u32 %s6813_s14, 4  ;;  %s4127_s16 = int_to_ptr.vmem [resolvable:$true] %s4126_s16 }
  0x1c   : > { %397 = vmatpush1.bf16.msra.mxu0 %v4190_v20  ;;  %438 = vmatpush1.bf16.msra.mxu1 %v4192_v22  ;;  %v4804_v46 = vld [vmem:[%s7192_s3 + $0x4d0] ss:$28 sps:$4 sm:$0xff]   ;;  %v4807_v49 = vld [vmem:[%s7192_s3 + $0x118] ss:$28 sps:$4 sm:$0xff]   ;;  %v4815_v51 = vld [vmem:[%s7192_s3 + $0xe4] ss:$28 sps:$4 sm:$0xff]  }
  0x1d   : > { %4210 = vmatprep.subr.msk.bf16.mxu0 %vm357_vm0, %v4203_v23  ;;  %4212 = vmatprep.subr.msk.bf16.mxu1 %vm357_vm0, %v4205_v26  ;;  %v4810_v50 = vld [vmem:[%s7192_s3 + $0x498] ss:$28 sps:$4 sm:$0xff]   ;;  %v4818_v52 = vld [vmem:[%s7192_s3 + $0x464] ss:$28 sps:$4 sm:$0xff]   ;;  %v4821_v55 = vld [vmem:[%s7192_s3 + $0xac] ss:$28 sps:$4 sm:$0xff]  }
  0x1e   : > { %v4813_v53 = vld [vmem:[%s7192_s3 + $0xe0] ss:$28 sps:$4 sm:$0xff]   ;;  %v4824_v56 = vld [vmem:[%s7192_s3 + $0x42c] ss:$28 sps:$4 sm:$0xff]   ;;  %v4827_v59 = vld [vmem:[%s7192_s3 + $0x74] ss:$28 sps:$4 sm:$0xff]  }
  0x1f   : > { %4207 = vmatmul.mubr.msk.bf16.vlgmr.msra.gmra.mxu0 %vm353_vm1, %v222_v32  ;;  %4209 = vmatmul.mubr.msk.bf16.vlgmr.msra.gmra.mxu1 %vm353_vm1, %v222_v32  ;;  %v4816_v54 = vld [vmem:[%s7192_s3 + $0x460] ss:$28 sps:$4 sm:$0xff]   ;;  %v4819_v57 = vld [vmem:[%s7192_s3 + $0xa8] ss:$28 sps:$4 sm:$0xff]   ;;  %v4830_v60 = vld [vmem:[%s7192_s3 + $0x3f4] ss:$28 sps:$4 sm:$0xff]  }
  0x20   : > { %477 = vmatpush1.bf16.msra.mxu0 %v371_v33  ;;  %518 = vmatpush1.bf16.msra.mxu1 %v377_v35  ;;  %v4822_v58 = vld [vmem:[%s7192_s3 + $0x428] ss:$28 sps:$4 sm:$0xff]   ;;  %v4825_v61 = vld [vmem:[%s7192_s3 + $0x70] ss:$28 sps:$4 sm:$0xff]   ;;  %v4833_v63 = vld [vmem:[%s7192_s3 + $0x3c] ss:$28 sps:$4 sm:$0xff]  }
  0x21   : > { %478 = vmatprep.subr.bf16.mxu0 %v4195_v34  ;;  %519 = vmatprep.subr.bf16.mxu1 %v4197_v36  ;;  %v4828_v62 = vld [vmem:[%s7192_s3 + $0x3f0] ss:$28 sps:$4 sm:$0xff]   ;;  %v4836_v0 = vld [vmem:[%s7192_s3 + $0x3bc] ss:$28 sps:$4 sm:$0xff]   ;;  %v4839_v3 = vld [vmem:[%s7192_s3 + $0x4] ss:$28 sps:$4 sm:$0xff]  }
  0x22   : > { %496 = vmatprep.mubr.bf16.mxu0 %v5511_v8  ;;  %537 = vmatprep.mubr.bf16.mxu1 %v5511_v8  ;;  %v4831_v1 = vld [vmem:[%s7192_s3 + $0x38] ss:$28 sps:$4 sm:$0xff]   ;;  %v4837_v4 = vld [vmem:[%s7192_s3] ss:$28 sps:$4 sm:$0xff]   ;;  %v4845_v7 = vld [vmem:[%s7192_s3 + $0x34c] ss:$28 sps:$4 sm:$0xff]  }
  0x23   : > { %v4834_v2 = vld [vmem:[%s7192_s3 + $0x3b8] ss:$28 sps:$4 sm:$0xff]   ;;  %v4842_v5 = vld [vmem:[%s7192_s3 + $0x384] ss:$28 sps:$4 sm:$0xff]   ;;  %v4848_v8 = vld [vmem:[%s7192_s3 + $0x6cc] ss:$28 sps:$4 sm:$0xff]  }
  0x24   : > { %479 = vmatpush1.bf16.msra.mxu0 %v4194_v37  ;;  %520 = vmatpush1.bf16.msra.mxu1 %v4196_v38  ;;  %v4840_v6 = vld [vmem:[%s7192_s3 + $0x380] ss:$28 sps:$4 sm:$0xff]   ;;  %v4843_v9 = vld [vmem:[%s7192_s3 + $0x348] ss:$28 sps:$4 sm:$0xff]   ;;  %v4851_v11 = vld [vmem:[%s7192_s3 + $0x314] ss:$28 sps:$4 sm:$0xff]  }
  0x25   : > { %3423 = vmatprep.subr.bf16.mxu0 %v4797_v39  ;;  %3464 = vmatprep.subr.bf16.mxu1 %v4800_v40  ;;  %v4846_v10 = vld [vmem:[%s7192_s3 + $0x6c8] ss:$28 sps:$4 sm:$0xff]   ;;  %v4854_v12 = vld [vmem:[%s7192_s3 + $0x694] ss:$28 sps:$4 sm:$0xff]   ;;  %v4857_v15 = vld [vmem:[%s7192_s3 + $0x2dc] ss:$28 sps:$4 sm:$0xff]  }
  0x26   : > { %v4849_v13 = vld [vmem:[%s7192_s3 + $0x310] ss:$28 sps:$4 sm:$0xff]   ;;  %v4860_v16 = vld [vmem:[%s7192_s3 + $0x65c] ss:$28 sps:$4 sm:$0xff]   ;;  %v4863_v19 = vld [vmem:[%s7192_s3 + $0x2a4] ss:$28 sps:$4 sm:$0xff]  }
  0x27   : > { %4211 = vmatmul.mubr.msk.bf16.vlgmr.msra.gmra.mxu0 %vm353_vm1, %v222_v32  ;;  %4213 = vmatmul.mubr.msk.bf16.vlgmr.msra.gmra.mxu1 %vm353_vm1, %v222_v32  ;;  %v4852_v14 = vld [vmem:[%s7192_s3 + $0x690] ss:$28 sps:$4 sm:$0xff]   ;;  %v4855_v17 = vld [vmem:[%s7192_s3 + $0x2d8] ss:$28 sps:$4 sm:$0xff]   ;;  %v4866_v20 = vld [vmem:[%s7192_s3 + $0x624] ss:$28 sps:$4 sm:$0xff]  }
  0x28   : > { %3424 = vmatpush1.bf16.msra.mxu0 %v4795_v41  ;;  %3465 = vmatpush1.bf16.msra.mxu1 %v4798_v42  ;;  %v4858_v18 = vld [vmem:[%s7192_s3 + $0x658] ss:$28 sps:$4 sm:$0xff]   ;;  %v4861_v21 = vld [vmem:[%s7192_s3 + $0x2a0] ss:$28 sps:$4 sm:$0xff]   ;;  %v4869_v23 = vld [vmem:[%s7192_s3 + $0x26c] ss:$28 sps:$4 sm:$0xff]   ;;  %v241_v41 = vlaneseq }
  0x29   : > { %3425 = vmatprep.subr.bf16.mxu0 %v4803_v43  ;;  %3466 = vmatprep.subr.bf16.mxu1 %v4806_v44  ;;  %v4864_v22 = vld [vmem:[%s7192_s3 + $0x620] ss:$28 sps:$4 sm:$0xff]   ;;  %v4872_v24 = vld [vmem:[%s7192_s3 + $0x5ec] ss:$28 sps:$4 sm:$0xff]   ;;  %v4875_v27 = vld [vmem:[%s7192_s3 + $0x234] ss:$28 sps:$4 sm:$0xff]  }
  0x2a   : > { %v4867_v25 = vld [vmem:[%s7192_s3 + $0x268] ss:$28 sps:$4 sm:$0xff]   ;;  %v4878_v28 = vld [vmem:[%s7192_s3 + $0x5b4] ss:$28 sps:$4 sm:$0xff]   ;;  %v4881_v31 = vld [vmem:[%s7192_s3 + $0x1fc] ss:$28 sps:$4 sm:$0xff]  }
  0x2b   : > { %v4870_v26 = vld [vmem:[%s7192_s3 + $0x5e8] ss:$28 sps:$4 sm:$0xff]   ;;  %v4873_v29 = vld [vmem:[%s7192_s3 + $0x230] ss:$28 sps:$4 sm:$0xff]   ;;  %v4884_v32 = vld [vmem:[%s7192_s3 + $0x57c] ss:$28 sps:$4 sm:$0xff]  }
  0x2c   : > { %3426 = vmatpush1.bf16.msra.mxu0 %v4801_v45  ;;  %3467 = vmatpush1.bf16.msra.mxu1 %v4804_v46  ;;  %v4876_v30 = vld [vmem:[%s7192_s3 + $0x5b0] ss:$28 sps:$4 sm:$0xff]   ;;  %v4879_v33 = vld [vmem:[%s7192_s3 + $0x1f8] ss:$28 sps:$4 sm:$0xff]   ;;  %v4887_v35 = vld [vmem:[%s7192_s3 + $0x1c4] ss:$28 sps:$4 sm:$0xff]  }
  0x2d   : > { %3427 = vmatprep.subr.bf16.mxu0 %v4809_v47  ;;  %3468 = vmatprep.subr.bf16.mxu1 %v4812_v48  ;;  %v4882_v34 = vld [vmem:[%s7192_s3 + $0x578] ss:$28 sps:$4 sm:$0xff]   ;;  %v4890_v36 = vld [vmem:[%s7192_s3 + $0x544] ss:$28 sps:$4 sm:$0xff]   ;;  %v4893_v39 = vld [vmem:[%s7192_s3 + $0x88c] ss:$28 sps:$4 sm:$0xff]  }
  0x2e   : > { %v4885_v37 = vld [vmem:[%s7192_s3 + $0x1c0] ss:$28 sps:$4 sm:$0xff]   ;;  %v4896_v40 = vld [vmem:[%s7192_s3 + $0xc0c] ss:$28 sps:$4 sm:$0xff]   ;;  %v5854_v42 = vshrl.u32 %v241_v41, 7  ;;  %vm4109_vm2 = vcmask 130048  }
  0x2f   : > { %v4888_v38 = vld [vmem:[%s7192_s3 + $0x540] ss:$28 sps:$4 sm:$0xff]   ;;  %s5449_s13 = scalar_lea.vmem %s4127_s16, 896  ;;  %s5453_s22 = sshll.u32 %s5512_s30, 4  ;;  %s5454_s22 = int_to_ptr.vmem [resolvable:$false] %s5453_s22 }
  0x30   : > { %3428 = vmatpush1.bf16.msra.mxu0 %v4807_v49  ;;  %3469 = vmatpush1.bf16.msra.mxu1 %v4810_v50  ;;  %v243_v43 = vsub.s32 0, %v5854_v42  ;;  %v5860_v44 = vld [vmem:[%s7191_s2] sm:$0xff]  ;;  %v251_v45 = vsub.s32 2, %v5854_v42  ;;  %v247_v46 = vsub.s32 1, %v5854_v42  ;;  %v255_v47 = vsub.s32 3, %v5854_v42  ;;  %p5450_p11 = scmp.ne.s32.totalorder %s4127_s16, %s5449_s13  ;;  %s5455_s6 = scalar_lea.vmem %s5454_s22, 1792 }
  0x31   : > { %3429 = vmatprep.subr.bf16.mxu0 %v4815_v51  ;;  %3470 = vmatprep.subr.bf16.mxu1 %v4818_v52  ;;  %v4911_v41 = vld [vmem:[%s7192_s3 + $0x7e4] ss:$28 sps:$4 sm:$0xff]   ;;  %p5456_p0 = scmp.lt.s32.totalorder %s4127_s16, %s5454_s22  ;;  %p5457_p1 = scmp.lt.s32.totalorder %s5455_s6, %s5449_s13 }
  0x32   : > { %v244_v48 = vrot.slane %v5860_v44, %v243_v43  ;;  %v252_v49 = vrot.slane %v5860_v44, %v251_v45  ;;  %v248_v50 = vrot.slane %v5860_v44, %v247_v46  ;;  %v256_v52 = vrot.slane %v5860_v44, %v255_v47  ;;  %p5451_p12 = pnand %p5450_p11, %p5581_p5 }
  0x33   : > { %p5458_p2 = por %p5457_p1, %p5456_p0 }
  0x34   : > { %3430 = vmatpush1.bf16.msra.mxu0 %v4813_v53  ;;  %3471 = vmatpush1.bf16.msra.mxu1 %v4816_v54  ;;  %p5452_p13 = pneg %p5451_p12 }
  0x35   : > { %3431 = vmatprep.subr.bf16.mxu0 %v4821_v55  ;;  %3472 = vmatprep.subr.bf16.mxu1 %v4824_v56 }
  0x36   : > { %p5459_p3 = pnand %p5458_p2, %p5452_p13 }
  0x38   : > { %3432 = vmatpush1.bf16.msra.mxu0 %v4819_v57  ;;  %3473 = vmatpush1.bf16.msra.mxu1 %v4822_v58 }
  0x39   : > { %3433 = vmatprep.subr.bf16.mxu0 %v4827_v59  ;;  %3474 = vmatprep.subr.bf16.mxu1 %v4830_v60  ;;  %v263_v60 = vsub.s32 5, %v5854_v42 }
  0x3c   : > { %3434 = vmatpush1.bf16.msra.mxu0 %v4825_v61  ;;  %3475 = vmatpush1.bf16.msra.mxu1 %v4828_v62  ;;  %v271_v61 = vsub.s32 7, %v5854_v42 }
  0x3d   : > { %3435 = vmatprep.subr.bf16.mxu0 %v4833_v63  ;;  %3476 = vmatprep.subr.bf16.mxu1 %v4836_v0 }
  0x40   : > { %3436 = vmatpush1.bf16.msra.mxu0 %v4831_v1  ;;  %3477 = vmatpush1.bf16.msra.mxu1 %v4834_v2 }
  0x41   : > { %3437 = vmatprep.subr.bf16.mxu0 %v4839_v3  ;;  %3478 = vmatprep.subr.bf16.mxu1 %v4842_v5 }
  0x44   : > { %3438 = vmatpush1.bf16.msra.mxu0 %v4837_v4  ;;  %3479 = vmatpush1.bf16.msra.mxu1 %v4840_v6 }
  0x45   : > { %3439 = vmatprep.subr.bf16.mxu0 %v4845_v7  ;;  %3480 = vmatprep.subr.bf16.mxu1 %v4848_v8 }
  0x48   : > { %3440 = vmatpush2.bf16.msra.mxu0 %v4843_v9  ;;  %3481 = vmatpush2.bf16.msra.mxu1 %v4846_v10  ;;  %v4891_v9 = vld [vmem:[%s7192_s3 + $0x888] ss:$28 sps:$4 sm:$0xff]   ;;  %v264_v10 = vrot.slane %v5860_v44, %v263_v60 }
  0x49   : > { %3441 = vmatprep.subr.bf16.mxu0 %v4851_v11  ;;  %3482 = vmatprep.subr.bf16.mxu1 %v4854_v12  ;;  %v4894_v12 = vld [vmem:[%s7192_s3 + $0xc08] ss:$28 sps:$4 sm:$0xff]  }
  0x4c   : > { %3442 = vmatpush2.bf16.msra.mxu0 %v4849_v13  ;;  %3483 = vmatpush2.bf16.msra.mxu1 %v4852_v14  ;;  %v4899_v13 = vld [vmem:[%s7192_s3 + $0x854] ss:$28 sps:$4 sm:$0xff]  }
  0x4d   : > { %3443 = vmatprep.subr.bf16.mxu0 %v4857_v15  ;;  %3484 = vmatprep.subr.bf16.mxu1 %v4860_v16  ;;  %v272_v15 = vrot.slane %v5860_v44, %v271_v61  ;;  %v4929_v61 = vld [vmem:[%s7192_s3 + $0x73c] ss:$28 sps:$4 sm:$0xff]  }
  0x50   : > { %3444 = vmatpush2.bf16.msra.mxu0 %v4855_v17  ;;  %3485 = vmatpush2.bf16.msra.mxu1 %v4858_v18 }
  0x51   : > { %3445 = vmatprep.subr.bf16.mxu0 %v4863_v19  ;;  %3486 = vmatprep.subr.bf16.mxu1 %v4866_v20 }
  0x54   : > { %3446 = vmatpush2.bf16.msra.mxu0 %v4861_v21  ;;  %3487 = vmatpush2.bf16.msra.mxu1 %v4864_v22  ;;  %v4902_v22 = vld [vmem:[%s7192_s3 + $0xbd4] ss:$28 sps:$4 sm:$0xff]  }
  0x55   : > { %3447 = vmatprep.subr.bf16.mxu0 %v4869_v23  ;;  %3488 = vmatprep.subr.bf16.mxu1 %v4872_v24 }
  0x58   : > { %3448 = vmatpush2.bf16.msra.mxu0 %v4867_v25  ;;  %3489 = vmatpush2.bf16.msra.mxu1 %v4870_v26  ;;  %v4897_v25 = vld [vmem:[%s7192_s3 + $0x850] ss:$28 sps:$4 sm:$0xff]  }
  0x59   : > { %3449 = vmatprep.subr.bf16.mxu0 %v4875_v27  ;;  %3490 = vmatprep.subr.bf16.mxu1 %v4878_v28  ;;  %v4900_v28 = vld [vmem:[%s7192_s3 + $0xbd0] ss:$28 sps:$4 sm:$0xff]  }
  0x5c   : > { %3450 = vmatpush2.bf16.msra.mxu0 %v4873_v29  ;;  %3491 = vmatpush2.bf16.msra.mxu1 %v4876_v30  ;;  %v4905_v29 = vld [vmem:[%s7192_s3 + $0x81c] ss:$28 sps:$4 sm:$0xff]  }
  0x5d   : > { %3451 = vmatprep.subr.bf16.mxu0 %v4881_v31  ;;  %3492 = vmatprep.subr.bf16.mxu1 %v4884_v32 }
  0x60   : > { %3452 = vmatpush2.bf16.msra.mxu0 %v4879_v33  ;;  %3493 = vmatpush2.bf16.msra.mxu1 %v4882_v34  ;;  %v4908_v34 = vld [vmem:[%s7192_s3 + $0xb9c] ss:$28 sps:$4 sm:$0xff]  }
  0x61   : > { %3453 = vmatprep.subr.bf16.mxu0 %v4887_v35  ;;  %3494 = vmatprep.subr.bf16.mxu1 %v4890_v36 }
  0x64   : > { %3454 = vmatpush2.bf16.msra.mxu0 %v4885_v37  ;;  %3495 = vmatpush2.bf16.msra.mxu1 %v4888_v38  ;;  %v4903_v37 = vld [vmem:[%s7192_s3 + $0x818] ss:$28 sps:$4 sm:$0xff]  }
  0x65   : > { %3505 = vmatprep.subr.bf16.mxu0 %v4893_v39  ;;  %3546 = vmatprep.subr.bf16.mxu1 %v4896_v40  ;;  %v4906_v40 = vld [vmem:[%s7192_s3 + $0xb98] ss:$28 sps:$4 sm:$0xff]  }
  0xdf   : > { %v416_v51 = vpop.f32.mrf.mxu0  ;;  %v457_v54 = vpop.f32.mrf.mxu1 }
  0xe0   : > { %v417_v53 = vadd.f32 %v416_v51, %v244_v48  ;;  %v458_v55 = vadd.f32 %v457_v54, %v252_v49  ;;  %v4909_v49 = vld [vmem:[%s7192_s3 + $0x7e0] ss:$28 sps:$4 sm:$0xff]   ;;  %v4920_v54 = vld [vmem:[%s7192_s3 + $0xb2c] ss:$28 sps:$4 sm:$0xff]  }
  0xe1   : > { %v418_v56 = vpop.f32.mrf.mxu0  ;;  %v459_v59 = vpop.f32.mrf.mxu1  ;;  %v4912_v51 = vld [vmem:[%s7192_s3 + $0xb60] ss:$28 sps:$4 sm:$0xff]  }
  0xe2   : > { %v546_v57 = vmul.f32 0.2, %v417_v53  ;;  %v419_v58 = vadd.f32 %v418_v56, %v248_v50  ;;  %v548_v62 = vmul.f32 0.2, %v458_v55  ;;  %v460_v63 = vadd.f32 %v459_v59, %v256_v52  ;;  %v4914_v50 = vld [vmem:[%s7192_s3 + $0xb64] ss:$28 sps:$4 sm:$0xff]  }
  0xe3   : > { %v420_v0 = vpop.f32.mrf.mxu0  ;;  %v461_v2 = vpop.f32.mrf.mxu1  ;;  %v4917_v52 = vld [vmem:[%s7192_s3 + $0x7ac] ss:$28 sps:$4 sm:$0xff]   ;;  %v4923_v56 = vld [vmem:[%s7192_s3 + $0x774] ss:$28 sps:$4 sm:$0xff]  }
  0xe4   : > { %v547_v1 = vmul.f32 0.2, %v419_v58  ;;  %v554_v3 = vmax.f32 %v417_v53, %v546_v57  ;;  %v549_v4 = vmul.f32 0.2, %v460_v63  ;;  %v556_v6 = vmax.f32 %v458_v55, %v548_v62  ;;  %v4915_v53 = vld [vmem:[%s7192_s3 + $0x7a8] ss:$28 sps:$4 sm:$0xff]  }
  0xe5   : > { %v421_v5 = vpop.f32.mrf.mxu0  ;;  %v462_v8 = vpop.f32.mrf.mxu1  ;;  %v4918_v55 = vld [vmem:[%s7192_s3 + $0xb28] ss:$28 sps:$4 sm:$0xff]   ;;  %v4921_v57 = vld [vmem:[%s7192_s3 + $0x770] ss:$28 sps:$4 sm:$0xff]   ;;  %v4927_v62 = vld [vmem:[%s7192_s3 + $0x738] ss:$28 sps:$4 sm:$0xff]  }
  0xe6   : > { %v555_v7 = vmax.f32 %v419_v58, %v547_v1  ;;  %v557_v11 = vmax.f32 %v460_v63, %v549_v4  ;;  %v5898_v18 = vpack.c.bf16 %v554_v3, %v554_v3  ;;  %v5902_v21 = vpack.c.bf16 %v556_v6, %v556_v6  ;;  %v4926_v58 = vld [vmem:[%s7192_s3 + $0xaf4] ss:$28 sps:$4 sm:$0xff]   ;;  %v4932_v63 = vld [vmem:[%s7192_s3 + $0xabc] ss:$28 sps:$4 sm:$0xff]   ;;  %v4935_v1 = vld [vmem:[%s7192_s3 + $0x704] ss:$28 sps:$4 sm:$0xff]  }
  0xe7   : > { %v5891_v14 = vpop.f32.mrf.mxu0  ;;  %v5896_v17 = vpop.f32.mrf.mxu1  ;;  %v4924_v59 = vld [vmem:[%s7192_s3 + $0xaf0] ss:$28 sps:$4 sm:$0xff]   ;;  %v4930_v0 = vld [vmem:[%s7192_s3 + $0xab8] ss:$28 sps:$4 sm:$0xff]   ;;  %v4933_v2 = vld [vmem:[%s7192_s3 + $0x700] ss:$28 sps:$4 sm:$0xff]  }
  0xe8   : > { %v5894_v16 = vpack.c.bf16 %v555_v7, %v555_v7  ;;  %v5900_v19 = vpack.c.bf16 %v557_v11, %v557_v11  ;;  %v4938_v3 = vld [vmem:[%s7192_s3 + $0xa84] ss:$28 sps:$4 sm:$0xff]   ;;  %v4941_v5 = vld [vmem:[%s7192_s3 + $0xa4c] ss:$28 sps:$4 sm:$0xff]   ;;  %v4950_v11 = vld [vmem:[%s7192_s3 + $0xd94] ss:$28 sps:$4 sm:$0xff]  }
  0xe9   : > { %v500_v20 = vpop.f32.mrf.mxu0  ;;  %v541_v24 = vpop.f32.mrf.mxu1  ;;  %v4936_v4 = vld [vmem:[%s7192_s3 + $0xa80] ss:$28 sps:$4 sm:$0xff]   ;;  %v4939_v6 = vld [vmem:[%s7192_s3 + $0xa48] ss:$28 sps:$4 sm:$0xff]  }
  0xea   : > { %3455 = vmatprep.mubr.bf16.mxu0 %v5894_v16  ;;  %v501_v23 = vadd.f32 %v500_v20, %v264_v10  ;;  %3496 = vmatprep.mubr.bf16.mxu1 %v5900_v19  ;;  %v542_v27 = vadd.f32 %v541_v24, %v272_v15  ;;  %v4944_v7 = vld [vmem:[%s7192_s3 + $0xdcc] ss:$28 sps:$4 sm:$0xff]   ;;  %v4951_v15 = vld [vmem:[%s7192_s3 + $0x9d8] ss:$28 sps:$4 sm:$0xff]   ;;  %v4957_v24 = vld [vmem:[%s7192_s3 + $0x9a0] ss:$28 sps:$4 sm:$0xff]  }
  0xeb   : > { %3456 = vmatmul.mubr.bf16.vlgmr.msra.gmra.mxu0 %v5898_v18  ;;  %v502_v26 = vpop.f32.mrf.mxu0  ;;  %3497 = vmatmul.mubr.bf16.vlgmr.msra.gmra.mxu1 %v5902_v21  ;;  %v543_v31 = vpop.f32.mrf.mxu1  ;;  %v4942_v8 = vld [vmem:[%s7192_s3 + $0xdc8] ss:$28 sps:$4 sm:$0xff]   ;;  %v4945_v10 = vld [vmem:[%s7192_s3 + $0xa10] ss:$28 sps:$4 sm:$0xff]   ;;  %v4956_v20 = vld [vmem:[%s7192_s3 + $0xd5c] ss:$28 sps:$4 sm:$0xff]  }
  0xec   : > { %3506 = vmatpush1.bf16.msra.mxu0 %v4891_v9  ;;  %v551_v30 = vmul.f32 0.2, %v501_v23  ;;  %3547 = vmatpush1.bf16.msra.mxu1 %v4894_v12  ;;  %v553_v32 = vmul.f32 0.2, %v542_v27  ;;  %v4947_v9 = vld [vmem:[%s7192_s3 + $0xa14] ss:$28 sps:$4 sm:$0xff]  }
  0xed   : > { %3507 = vmatprep.subr.bf16.mxu0 %v4899_v13  ;;  %v503_v33 = vpop.f32.mrf.mxu0  ;;  %3548 = vmatprep.subr.bf16.mxu1 %v4902_v22  ;;  %v544_v36 = vpop.f32.mrf.mxu1  ;;  %v4948_v12 = vld [vmem:[%s7192_s3 + $0xd90] ss:$28 sps:$4 sm:$0xff]   ;;  %v4953_v13 = vld [vmem:[%s7192_s3 + $0x9dc] ss:$28 sps:$4 sm:$0xff]   ;;  %v4963_v31 = vld [vmem:[%s7192_s3 + $0x968] ss:$28 sps:$4 sm:$0xff]  }
  0xee   : > { %v559_v35 = vmax.f32 %v501_v23, %v551_v30  ;;  %v561_v38 = vmax.f32 %v542_v27, %v553_v32  ;;  %v4954_v22 = vld [vmem:[%s7192_s3 + $0xd58] ss:$28 sps:$4 sm:$0xff]   ;;  %v4959_v23 = vld [vmem:[%s7192_s3 + $0x9a4] ss:$28 sps:$4 sm:$0xff]   ;;  %v259_v27 = vsub.s32 4, %v5854_v42  ;;  %v267_v30 = vsub.s32 6, %v5854_v42 }
  0xef   : > { %v4960_v26 = vld [vmem:[%s7192_s3 + $0xd20] ss:$28 sps:$4 sm:$0xff]   ;;  %v4966_v33 = vld [vmem:[%s7192_s3 + $0xce8] ss:$28 sps:$4 sm:$0xff]   ;;  %v4974_v36 = vld [vmem:[%s7192_s3 + $0xcb4] ss:$28 sps:$4 sm:$0xff]  }
  0xf0   : > { %3508 = vmatpush1.bf16.msra.mxu0 %v4897_v25  ;;  %v5926_v39 = vpack.c.bf16 %v559_v35, %v559_v35  ;;  %3549 = vmatpush1.bf16.msra.mxu1 %v4900_v28  ;;  %v5934_v48 = vpack.c.bf16 %v561_v38, %v561_v38  ;;  %v4962_v25 = vld [vmem:[%s7192_s3 + $0xd24] ss:$28 sps:$4 sm:$0xff]   ;;  %v4965_v28 = vld [vmem:[%s7192_s3 + $0x96c] ss:$28 sps:$4 sm:$0xff]   ;;  %v260_v32 = vrot.slane %v5860_v44, %v259_v27 }
  0xf1   : > { %3509 = vmatprep.subr.bf16.mxu0 %v4905_v29  ;;  %3550 = vmatprep.subr.bf16.mxu1 %v4908_v34  ;;  %v4968_v29 = vld [vmem:[%s7192_s3 + $0xcec] ss:$28 sps:$4 sm:$0xff]   ;;  %v4971_v34 = vld [vmem:[%s7192_s3 + $0x934] ss:$28 sps:$4 sm:$0xff]   ;;  %v268_v35 = vrot.slane %v5860_v44, %v267_v30  ;;  %v4977_v44 = vld [vmem:[%s7192_s3 + $0x8fc] ss:$28 sps:$4 sm:$0xff]  }
  0xf2   : > { %3537 = vmatprep.mubr.bf16.mxu0 %v5926_v39  ;;  %3578 = vmatprep.mubr.bf16.mxu1 %v5934_v48  ;;  %v499_v38 = vadd.f32 %v5891_v14, %v260_v32  ;;  %v4975_v14 = vld [vmem:[%s7192_s3 + $0x8f8] ss:$28 sps:$4 sm:$0xff]   ;;  %v5026_v32 = vld [vmem:[%s7192_s3 + $0x3c0] ss:$28 sps:$4 sm:$0xff]  }
  0xf4   : > { %3510 = vmatpush1.bf16.msra.mxu0 %v4903_v37  ;;  %3551 = vmatpush1.bf16.msra.mxu1 %v4906_v40  ;;  %v4969_v37 = vld [vmem:[%s7192_s3 + $0x930] ss:$28 sps:$4 sm:$0xff]  }
  0xf5   : > { %3511 = vmatprep.subr.bf16.mxu0 %v4911_v41  ;;  %3552 = vmatprep.subr.bf16.mxu1 %v4914_v50  ;;  %v4972_v40 = vld [vmem:[%s7192_s3 + $0xcb0] ss:$28 sps:$4 sm:$0xff]   ;;  %v540_v41 = vadd.f32 %v5896_v17, %v268_v35  ;;  %v550_v50 = vmul.f32 0.2, %v499_v38  ;;  %v4983_v17 = vld [vmem:[%s7192_s3 + $0x8c4] ss:$28 sps:$4 sm:$0xff]  }
  0xf6   : > { %v5029_v35 = vld [vmem:[%s7192_s3 + $0x8] ss:$28 sps:$4 sm:$0xff]  }
  0xf8   : > { %3512 = vmatpush1.bf16.msra.mxu0 %v4909_v49  ;;  %3553 = vmatpush1.bf16.msra.mxu1 %v4912_v51  ;;  %v4980_v49 = vld [vmem:[%s7192_s3 + $0xc7c] ss:$28 sps:$4 sm:$0xff]  }
  0xf9   : > { %3513 = vmatprep.subr.bf16.mxu0 %v4917_v52  ;;  %3554 = vmatprep.subr.bf16.mxu1 %v4920_v54  ;;  %v4978_v51 = vld [vmem:[%s7192_s3 + $0xc78] ss:$28 sps:$4 sm:$0xff]   ;;  %v552_v52 = vmul.f32 0.2, %v540_v41  ;;  %v4981_v54 = vld [vmem:[%s7192_s3 + $0x8c0] ss:$28 sps:$4 sm:$0xff]  }
  0xfc   : > { %3514 = vmatpush1.bf16.msra.mxu0 %v4915_v53  ;;  %3555 = vmatpush1.bf16.msra.mxu1 %v4918_v55  ;;  %v4986_v53 = vld [vmem:[%s7192_s3 + $0xc44] ss:$28 sps:$4 sm:$0xff]   ;;  %v558_v55 = vmax.f32 %v499_v38, %v550_v50  ;;  %v5040_v38 = vld [vmem:[%s7192_s3 + $0x6d4] ss:$28 sps:$4 sm:$0xff]  }
  0xfd   : > { %3515 = vmatprep.subr.bf16.mxu0 %v4923_v56  ;;  %3556 = vmatprep.subr.bf16.mxu1 %v4926_v58  ;;  %v4984_v56 = vld [vmem:[%s7192_s3 + $0xc40] ss:$28 sps:$4 sm:$0xff]   ;;  %v560_v58 = vmax.f32 %v540_v41, %v552_v52  ;;  %v5044_v50 = vld [vmem:[%s7192_s3 + $0x698] ss:$28 sps:$4 sm:$0xff]  }
  0xfe   : > { %v5043_v41 = vld [vmem:[%s7192_s3 + $0x31c] ss:$28 sps:$4 sm:$0xff]  }
  0xff   : > { %v5047_v52 = vld [vmem:[%s7192_s3 + $0x2e0] ss:$28 sps:$4 sm:$0xff]  }
 0x100   : > { %3516 = vmatpush1.bf16.msra.mxu0 %v4921_v57  ;;  %3557 = vmatpush1.bf16.msra.mxu1 %v4924_v59  ;;  %v4989_v57 = vld [vmem:[%s7192_s3 + $0x194] ss:$28 sps:$4 sm:$0xff]  }
 0x101   : > { %3517 = vmatprep.subr.bf16.mxu0 %v4929_v61  ;;  %3558 = vmatprep.subr.bf16.mxu1 %v4932_v63  ;;  %v4992_v59 = vld [vmem:[%s7192_s3 + $0x514] ss:$28 sps:$4 sm:$0xff]  }
 0x102   : > { %v4987_v61 = vld [vmem:[%s7192_s3 + $0x190] ss:$28 sps:$4 sm:$0xff]  }
 0x103   : > { %v4990_v63 = vld [vmem:[%s7192_s3 + $0x510] ss:$28 sps:$4 sm:$0xff]  }
 0x104   : > { %3518 = vmatpush1.bf16.msra.mxu0 %v4927_v62  ;;  %3559 = vmatpush1.bf16.msra.mxu1 %v4930_v0  ;;  %v6110_v62 = vpack.c.bf16 %v558_v55, %v558_v55  ;;  %v6115_v0 = vpack.c.bf16 %v560_v58, %v560_v58  ;;  %v5058_v55 = vld [vmem:[%s7192_s3 + $0x62c] ss:$28 sps:$4 sm:$0xff]   ;;  %v5061_v58 = vld [vmem:[%s7192_s3 + $0x274] ss:$28 sps:$4 sm:$0xff]  }
 0x105   : > { %3519 = vmatprep.subr.bf16.mxu0 %v4935_v1  ;;  %3560 = vmatprep.subr.bf16.mxu1 %v4938_v3  ;;  %v4995_v1 = vld [vmem:[%s7192_s3 + $0x15c] ss:$28 sps:$4 sm:$0xff]  }
 0x106   : > { %v4993_v3 = vld [vmem:[%s7192_s3 + $0x158] ss:$28 sps:$4 sm:$0xff]  }
 0x108   : > { %3520 = vmatpush1.bf16.msra.mxu0 %v4933_v2  ;;  %3561 = vmatpush1.bf16.msra.mxu1 %v4936_v4  ;;  %v4998_v2 = vld [vmem:[%s7192_s3 + $0x4dc] ss:$28 sps:$4 sm:$0xff]  }
 0x109   : > { %3521 = vmatprep.subr.bf16.mxu0 %v4941_v5  ;;  %3562 = vmatprep.subr.bf16.mxu1 %v4944_v7  ;;  %v4996_v4 = vld [vmem:[%s7192_s3 + $0x4d8] ss:$28 sps:$4 sm:$0xff]   ;;  %v5001_v5 = vld [vmem:[%s7192_s3 + $0x124] ss:$28 sps:$4 sm:$0xff]  }
 0x10a   : > { %v4999_v7 = vld [vmem:[%s7192_s3 + $0x120] ss:$28 sps:$4 sm:$0xff]  }
 0x10c   : > { %3522 = vmatpush2.bf16.msra.mxu0 %v4939_v6  ;;  %3563 = vmatpush2.bf16.msra.mxu1 %v4942_v8  ;;  %v5004_v6 = vld [vmem:[%s7192_s3 + $0x4a4] ss:$28 sps:$4 sm:$0xff]  }
 0x10d   : > { %3523 = vmatprep.subr.bf16.mxu0 %v4947_v9  ;;  %3564 = vmatprep.subr.bf16.mxu1 %v4950_v11  ;;  %v5002_v8 = vld [vmem:[%s7192_s3 + $0x4a0] ss:$28 sps:$4 sm:$0xff]   ;;  %v5007_v9 = vld [vmem:[%s7192_s3 + $0xec] ss:$28 sps:$4 sm:$0xff]  }
 0x10e   : > { %v5005_v11 = vld [vmem:[%s7192_s3 + $0xe8] ss:$28 sps:$4 sm:$0xff]  }
 0x110   : > { %3524 = vmatpush2.bf16.msra.mxu0 %v4945_v10  ;;  %3565 = vmatpush2.bf16.msra.mxu1 %v4948_v12  ;;  %v5010_v10 = vld [vmem:[%s7192_s3 + $0x46c] ss:$28 sps:$4 sm:$0xff]  }
 0x111   : > { %3525 = vmatprep.subr.bf16.mxu0 %v4953_v13  ;;  %3566 = vmatprep.subr.bf16.mxu1 %v4956_v20  ;;  %v5008_v12 = vld [vmem:[%s7192_s3 + $0x468] ss:$28 sps:$4 sm:$0xff]   ;;  %v5013_v13 = vld [vmem:[%s7192_s3 + $0xb4] ss:$28 sps:$4 sm:$0xff]  }
 0x112   : > { %v5011_v20 = vld [vmem:[%s7192_s3 + $0xb0] ss:$28 sps:$4 sm:$0xff]  }
 0x114   : > { %3526 = vmatpush2.bf16.msra.mxu0 %v4951_v15  ;;  %3567 = vmatpush2.bf16.msra.mxu1 %v4954_v22  ;;  %v5016_v15 = vld [vmem:[%s7192_s3 + $0x434] ss:$28 sps:$4 sm:$0xff]  }
 0x115   : > { %3527 = vmatprep.subr.bf16.mxu0 %v4959_v23  ;;  %3568 = vmatprep.subr.bf16.mxu1 %v4962_v25  ;;  %v5014_v22 = vld [vmem:[%s7192_s3 + $0x430] ss:$28 sps:$4 sm:$0xff]   ;;  %v5019_v23 = vld [vmem:[%s7192_s3 + $0x7c] ss:$28 sps:$4 sm:$0xff]  }
 0x116   : > { %v5017_v25 = vld [vmem:[%s7192_s3 + $0x78] ss:$28 sps:$4 sm:$0xff]  }
 0x118   : > { %3528 = vmatpush2.bf16.msra.mxu0 %v4957_v24  ;;  %3569 = vmatpush2.bf16.msra.mxu1 %v4960_v26  ;;  %v5022_v24 = vld [vmem:[%s7192_s3 + $0x3fc] ss:$28 sps:$4 sm:$0xff]  }
 0x119   : > { %3529 = vmatprep.subr.bf16.mxu0 %v4965_v28  ;;  %3570 = vmatprep.subr.bf16.mxu1 %v4968_v29  ;;  %v5020_v26 = vld [vmem:[%s7192_s3 + $0x3f8] ss:$28 sps:$4 sm:$0xff]   ;;  %v5025_v28 = vld [vmem:[%s7192_s3 + $0x44] ss:$28 sps:$4 sm:$0xff]  }
 0x11a   : > { %v5028_v29 = vld [vmem:[%s7192_s3 + $0x3c4] ss:$28 sps:$4 sm:$0xff]  }
 0x11c   : > { %3530 = vmatpush2.bf16.msra.mxu0 %v4963_v31  ;;  %3571 = vmatpush2.bf16.msra.mxu1 %v4966_v33  ;;  %v5023_v31 = vld [vmem:[%s7192_s3 + $0x40] ss:$28 sps:$4 sm:$0xff]   ;;  %v5031_v33 = vld [vmem:[%s7192_s3 + $0xc] ss:$28 sps:$4 sm:$0xff]  }
 0x11d   : > { %3531 = vmatprep.subr.bf16.mxu0 %v4971_v34  ;;  %3572 = vmatprep.subr.bf16.mxu1 %v4974_v36  ;;  %v5034_v34 = vld [vmem:[%s7192_s3 + $0x38c] ss:$28 sps:$4 sm:$0xff]  }
 0x11e   : > { %v5032_v36 = vld [vmem:[%s7192_s3 + $0x388] ss:$28 sps:$4 sm:$0xff]  }
 0x120   : > { %3532 = vmatpush2.bf16.msra.mxu0 %v4969_v37  ;;  %3573 = vmatpush2.bf16.msra.mxu1 %v4972_v40  ;;  %v5037_v37 = vld [vmem:[%s7192_s3 + $0x354] ss:$28 sps:$4 sm:$0xff]  }
 0x121   : > { %3533 = vmatprep.subr.bf16.mxu0 %v4977_v44  ;;  %3574 = vmatprep.subr.bf16.mxu1 %v4980_v49  ;;  %v5035_v40 = vld [vmem:[%s7192_s3 + $0x350] ss:$28 sps:$4 sm:$0xff]   ;;  %v5046_v49 = vld [vmem:[%s7192_s3 + $0x69c] ss:$28 sps:$4 sm:$0xff]  }
 0x122   : > { %v5038_v44 = vld [vmem:[%s7192_s3 + $0x6d0] ss:$28 sps:$4 sm:$0xff]  }
 0x124   : > { %3534 = vmatpush2.bf16.msra.mxu0 %v4975_v14  ;;  %3575 = vmatpush2.bf16.msra.mxu1 %v4978_v51  ;;  %v5041_v14 = vld [vmem:[%s7192_s3 + $0x318] ss:$28 sps:$4 sm:$0xff]   ;;  %v5049_v51 = vld [vmem:[%s7192_s3 + $0x2e4] ss:$28 sps:$4 sm:$0xff]  }
 0x125   : > { %3535 = vmatprep.subr.bf16.mxu0 %v4983_v17  ;;  %3576 = vmatprep.subr.bf16.mxu1 %v4986_v53  ;;  %v5052_v17 = vld [vmem:[%s7192_s3 + $0x664] ss:$28 sps:$4 sm:$0xff]  }
 0x126   : > { %v5050_v53 = vld [vmem:[%s7192_s3 + $0x660] ss:$28 sps:$4 sm:$0xff]  }
 0x128   : > { %3536 = vmatpush2.bf16.msra.mxu0 %v4981_v54  ;;  %3577 = vmatpush2.bf16.msra.mxu1 %v4984_v56  ;;  %v5055_v54 = vld [vmem:[%s7192_s3 + $0x2ac] ss:$28 sps:$4 sm:$0xff]  }
 0x129   : > { %3587 = vmatprep.subr.bf16.mxu0 %v4989_v57  ;;  %3628 = vmatprep.subr.bf16.mxu1 %v4992_v59  ;;  %v5053_v56 = vld [vmem:[%s7192_s3 + $0x2a8] ss:$28 sps:$4 sm:$0xff]   ;;  %v5064_v59 = vld [vmem:[%s7192_s3 + $0x5f4] ss:$28 sps:$4 sm:$0xff]  }
 0x12a   : > { %v5056_v57 = vld [vmem:[%s7192_s3 + $0x628] ss:$28 sps:$4 sm:$0xff]  }
 0x12b   : > { %3538 = vmatmul.mubr.bf16.vlgmr.msra.gmra.mxu0 %v6110_v62  ;;  %3579 = vmatmul.mubr.bf16.vlgmr.msra.gmra.mxu1 %v6115_v0 }
 0x12c   : > { %3588 = vmatpush1.bf16.msra.mxu0 %v4987_v61  ;;  %3619 = vmatprep.mubr.bf16.mxu0 %v5894_v16  ;;  %v5059_v61 = vld [vmem:[%s7192_s3 + $0x270] ss:$28 sps:$4 sm:$0xff]  }
 0x12d   : > { %3629 = vmatpush1.bf16.msra.mxu1 %v4990_v63  ;;  %3660 = vmatprep.mubr.bf16.mxu1 %v5900_v19  ;;  %v5062_v63 = vld [vmem:[%s7192_s3 + $0x5f0] ss:$28 sps:$4 sm:$0xff]  }
 0x12e   : > { %3589 = vmatprep.subr.bf16.mxu0 %v4995_v1  ;;  %3630 = vmatprep.subr.bf16.mxu1 %v4998_v2  ;;  %v5067_v1 = vld [vmem:[%s7192_s3 + $0x23c] ss:$28 sps:$4 sm:$0xff]  }
 0x12f   : > { %v5070_v2 = vld [vmem:[%s7192_s3 + $0x5bc] ss:$28 sps:$4 sm:$0xff]  }
 0x130   : > { %3590 = vmatpush1.bf16.msra.mxu0 %v4993_v3  ;;  %v5065_v3 = vld [vmem:[%s7192_s3 + $0x238] ss:$28 sps:$4 sm:$0xff]  }
 0x131   : > { %3631 = vmatpush1.bf16.msra.mxu1 %v4996_v4  ;;  %3591 = vmatprep.subr.bf16.mxu0 %v5001_v5  ;;  %v5068_v4 = vld [vmem:[%s7192_s3 + $0x5b8] ss:$28 sps:$4 sm:$0xff]   ;;  %v5073_v5 = vld [vmem:[%s7192_s3 + $0x204] ss:$28 sps:$4 sm:$0xff]  }
 0x132   : > { %3632 = vmatprep.subr.bf16.mxu1 %v5004_v6  ;;  %v5076_v6 = vld [vmem:[%s7192_s3 + $0x584] ss:$28 sps:$4 sm:$0xff]  }
 0x134   : > { %3592 = vmatpush1.bf16.msra.mxu0 %v4999_v7  ;;  %v5071_v7 = vld [vmem:[%s7192_s3 + $0x200] ss:$28 sps:$4 sm:$0xff]  }
 0x135   : > { %3633 = vmatpush1.bf16.msra.mxu1 %v5002_v8  ;;  %3593 = vmatprep.subr.bf16.mxu0 %v5007_v9  ;;  %v5074_v8 = vld [vmem:[%s7192_s3 + $0x580] ss:$28 sps:$4 sm:$0xff]   ;;  %v5079_v9 = vld [vmem:[%s7192_s3 + $0x1cc] ss:$28 sps:$4 sm:$0xff]  }
 0x136   : > { %3634 = vmatprep.subr.bf16.mxu1 %v5010_v10  ;;  %v5082_v10 = vld [vmem:[%s7192_s3 + $0x54c] ss:$28 sps:$4 sm:$0xff]  }
 0x138   : > { %3594 = vmatpush1.bf16.msra.mxu0 %v5005_v11  ;;  %v5077_v11 = vld [vmem:[%s7192_s3 + $0x1c8] ss:$28 sps:$4 sm:$0xff]  }
 0x139   : > { %3635 = vmatpush1.bf16.msra.mxu1 %v5008_v12  ;;  %3595 = vmatprep.subr.bf16.mxu0 %v5013_v13  ;;  %v5080_v12 = vld [vmem:[%s7192_s3 + $0x548] ss:$28 sps:$4 sm:$0xff]   ;;  %v5085_v13 = vld [vmem:[%s7192_s3 + $0x894] ss:$28 sps:$4 sm:$0xff]  }
 0x13a   : > { %3636 = vmatprep.subr.bf16.mxu1 %v5016_v15  ;;  %v5088_v15 = vld [vmem:[%s7192_s3 + $0xc14] ss:$28 sps:$4 sm:$0xff]  }
 0x13c   : > { %3596 = vmatpush1.bf16.msra.mxu0 %v5011_v20  ;;  %v5083_v20 = vld [vmem:[%s7192_s3 + $0x890] ss:$28 sps:$4 sm:$0xff]  }
 0x13d   : > { %3637 = vmatpush1.bf16.msra.mxu1 %v5014_v22  ;;  %3597 = vmatprep.subr.bf16.mxu0 %v5019_v23  ;;  %v5086_v22 = vld [vmem:[%s7192_s3 + $0xc10] ss:$28 sps:$4 sm:$0xff]   ;;  %v5091_v23 = vld [vmem:[%s7192_s3 + $0x85c] ss:$28 sps:$4 sm:$0xff]  }
 0x13e   : > { %3638 = vmatprep.subr.bf16.mxu1 %v5022_v24  ;;  %v5094_v24 = vld [vmem:[%s7192_s3 + $0xbdc] ss:$28 sps:$4 sm:$0xff]  }
 0x140   : > { %3598 = vmatpush1.bf16.msra.mxu0 %v5017_v25  ;;  %v5089_v25 = vld [vmem:[%s7192_s3 + $0x858] ss:$28 sps:$4 sm:$0xff]  }
 0x141   : > { %3639 = vmatpush1.bf16.msra.mxu1 %v5020_v26  ;;  %3599 = vmatprep.subr.bf16.mxu0 %v5025_v28  ;;  %v5092_v26 = vld [vmem:[%s7192_s3 + $0xbd8] ss:$28 sps:$4 sm:$0xff]   ;;  %v5097_v28 = vld [vmem:[%s7192_s3 + $0x824] ss:$28 sps:$4 sm:$0xff]  }
 0x142   : > { %3640 = vmatprep.subr.bf16.mxu1 %v5028_v29  ;;  %v5100_v29 = vld [vmem:[%s7192_s3 + $0xba4] ss:$28 sps:$4 sm:$0xff]  }
 0x144   : > { %3600 = vmatpush1.bf16.msra.mxu0 %v5023_v31  ;;  %v5095_v31 = vld [vmem:[%s7192_s3 + $0x820] ss:$28 sps:$4 sm:$0xff]  }
 0x145   : > { %3641 = vmatpush1.bf16.msra.mxu1 %v5026_v32  ;;  %3601 = vmatprep.subr.bf16.mxu0 %v5031_v33  ;;  %v5098_v32 = vld [vmem:[%s7192_s3 + $0xba0] ss:$28 sps:$4 sm:$0xff]   ;;  %v5103_v33 = vld [vmem:[%s7192_s3 + $0x7ec] ss:$28 sps:$4 sm:$0xff]  }
 0x146   : > { %3642 = vmatprep.subr.bf16.mxu1 %v5034_v34  ;;  %v5106_v34 = vld [vmem:[%s7192_s3 + $0xb6c] ss:$28 sps:$4 sm:$0xff]  }
 0x148   : > { %3602 = vmatpush1.bf16.msra.mxu0 %v5029_v35  ;;  %v5101_v35 = vld [vmem:[%s7192_s3 + $0x7e8] ss:$28 sps:$4 sm:$0xff]  }
 0x149   : > { %3643 = vmatpush1.bf16.msra.mxu1 %v5032_v36  ;;  %3603 = vmatprep.subr.bf16.mxu0 %v5037_v37  ;;  %v5104_v36 = vld [vmem:[%s7192_s3 + $0xb68] ss:$28 sps:$4 sm:$0xff]   ;;  %v5109_v37 = vld [vmem:[%s7192_s3 + $0x7b4] ss:$28 sps:$4 sm:$0xff]  }
 0x14a   : > { %3644 = vmatprep.subr.bf16.mxu1 %v5040_v38  ;;  %v5112_v38 = vld [vmem:[%s7192_s3 + $0xb34] ss:$28 sps:$4 sm:$0xff]  }
 0x14c   : > { %3604 = vmatpush2.bf16.msra.mxu0 %v5035_v40  ;;  %v5107_v40 = vld [vmem:[%s7192_s3 + $0x7b0] ss:$28 sps:$4 sm:$0xff]  }
 0x14d   : > { %3645 = vmatpush2.bf16.msra.mxu1 %v5038_v44  ;;  %3605 = vmatprep.subr.bf16.mxu0 %v5043_v41  ;;  %v5110_v44 = vld [vmem:[%s7192_s3 + $0xb30] ss:$28 sps:$4 sm:$0xff]   ;;  %v5115_v41 = vld [vmem:[%s7192_s3 + $0x77c] ss:$28 sps:$4 sm:$0xff]  }
 0x14e   : > { %3646 = vmatprep.subr.bf16.mxu1 %v5046_v49  ;;  %v5118_v49 = vld [vmem:[%s7192_s3 + $0xafc] ss:$28 sps:$4 sm:$0xff]  }
 0x150   : > { %3606 = vmatpush2.bf16.msra.mxu0 %v5041_v14  ;;  %v5113_v14 = vld [vmem:[%s7192_s3 + $0x778] ss:$28 sps:$4 sm:$0xff]  }
 0x151   : > { %3647 = vmatpush2.bf16.msra.mxu1 %v5044_v50  ;;  %3607 = vmatprep.subr.bf16.mxu0 %v5049_v51  ;;  %v5116_v50 = vld [vmem:[%s7192_s3 + $0xaf8] ss:$28 sps:$4 sm:$0xff]   ;;  %v5121_v51 = vld [vmem:[%s7192_s3 + $0x744] ss:$28 sps:$4 sm:$0xff]  }
 0x152   : > { %3648 = vmatprep.subr.bf16.mxu1 %v5052_v17  ;;  %v5124_v17 = vld [vmem:[%s7192_s3 + $0xac4] ss:$28 sps:$4 sm:$0xff]  }
 0x154   : > { %3608 = vmatpush2.bf16.msra.mxu0 %v5047_v52  ;;  %v5119_v52 = vld [vmem:[%s7192_s3 + $0x740] ss:$28 sps:$4 sm:$0xff]  }
 0x155   : > { %3649 = vmatpush2.bf16.msra.mxu1 %v5050_v53  ;;  %3609 = vmatprep.subr.bf16.mxu0 %v5055_v54  ;;  %v5122_v53 = vld [vmem:[%s7192_s3 + $0xac0] ss:$28 sps:$4 sm:$0xff]   ;;  %v5127_v54 = vld [vmem:[%s7192_s3 + $0x70c] ss:$28 sps:$4 sm:$0xff]  }
 0x156   : > { %3650 = vmatprep.subr.bf16.mxu1 %v5058_v55  ;;  %v5130_v55 = vld [vmem:[%s7192_s3 + $0xa8c] ss:$28 sps:$4 sm:$0xff]  }
 0x158   : > { %3610 = vmatpush2.bf16.msra.mxu0 %v5053_v56  ;;  %v5125_v56 = vld [vmem:[%s7192_s3 + $0x708] ss:$28 sps:$4 sm:$0xff]  }
 0x159   : > { %3651 = vmatpush2.bf16.msra.mxu1 %v5056_v57  ;;  %3611 = vmatprep.subr.bf16.mxu0 %v5061_v58  ;;  %v5128_v57 = vld [vmem:[%s7192_s3 + $0xa88] ss:$28 sps:$4 sm:$0xff]   ;;  %v5133_v58 = vld [vmem:[%s7192_s3 + $0xa54] ss:$28 sps:$4 sm:$0xff]  }
 0x15a   : > { %3652 = vmatprep.subr.bf16.mxu1 %v5064_v59  ;;  %v5136_v59 = vld [vmem:[%s7192_s3 + $0xdd4] ss:$28 sps:$4 sm:$0xff]  }
 0x15c   : > { %3612 = vmatpush2.bf16.msra.mxu0 %v5059_v61  ;;  %v5131_v61 = vld [vmem:[%s7192_s3 + $0xa50] ss:$28 sps:$4 sm:$0xff]  }
 0x15d   : > { %3653 = vmatpush2.bf16.msra.mxu1 %v5062_v63  ;;  %3613 = vmatprep.subr.bf16.mxu0 %v5067_v1  ;;  %v5134_v63 = vld [vmem:[%s7192_s3 + $0xdd0] ss:$28 sps:$4 sm:$0xff]   ;;  %v5139_v1 = vld [vmem:[%s7192_s3 + $0xa1c] ss:$28 sps:$4 sm:$0xff]  }
 0x15e   : > { %3654 = vmatprep.subr.bf16.mxu1 %v5070_v2  ;;  %v5142_v2 = vld [vmem:[%s7192_s3 + $0xd9c] ss:$28 sps:$4 sm:$0xff]  }
 0x160   : > { %3614 = vmatpush2.bf16.msra.mxu0 %v5065_v3  ;;  %v5137_v3 = vld [vmem:[%s7192_s3 + $0xa18] ss:$28 sps:$4 sm:$0xff]  }
 0x161   : > { %3655 = vmatpush2.bf16.msra.mxu1 %v5068_v4  ;;  %3615 = vmatprep.subr.bf16.mxu0 %v5073_v5  ;;  %v5140_v4 = vld [vmem:[%s7192_s3 + $0xd98] ss:$28 sps:$4 sm:$0xff]   ;;  %v5145_v5 = vld [vmem:[%s7192_s3 + $0x9e4] ss:$28 sps:$4 sm:$0xff]  }
 0x162   : > { %3656 = vmatprep.subr.bf16.mxu1 %v5076_v6  ;;  %v5148_v6 = vld [vmem:[%s7192_s3 + $0xd64] ss:$28 sps:$4 sm:$0xff]  }
 0x164   : > { %3616 = vmatpush2.bf16.msra.mxu0 %v5071_v7  ;;  %v5143_v7 = vld [vmem:[%s7192_s3 + $0x9e0] ss:$28 sps:$4 sm:$0xff]  }
 0x165   : > { %3657 = vmatpush2.bf16.msra.mxu1 %v5074_v8  ;;  %3617 = vmatprep.subr.bf16.mxu0 %v5079_v9  ;;  %v5146_v8 = vld [vmem:[%s7192_s3 + $0xd60] ss:$28 sps:$4 sm:$0xff]   ;;  %v5151_v9 = vld [vmem:[%s7192_s3 + $0x9ac] ss:$28 sps:$4 sm:$0xff]  }
 0x166   : > { %3658 = vmatprep.subr.bf16.mxu1 %v5082_v10  ;;  %v5154_v10 = vld [vmem:[%s7192_s3 + $0xd2c] ss:$28 sps:$4 sm:$0xff]  }
 0x168   : > { %3618 = vmatpush2.bf16.msra.mxu0 %v5077_v11  ;;  %v5149_v11 = vld [vmem:[%s7192_s3 + $0x9a8] ss:$28 sps:$4 sm:$0xff]  }
 0x169   : > { %3659 = vmatpush2.bf16.msra.mxu1 %v5080_v12  ;;  %3669 = vmatprep.subr.bf16.mxu0 %v5085_v13  ;;  %v5152_v12 = vld [vmem:[%s7192_s3 + $0xd28] ss:$28 sps:$4 sm:$0xff]   ;;  %v5157_v13 = vld [vmem:[%s7192_s3 + $0x974] ss:$28 sps:$4 sm:$0xff]  }
 0x16a   : > { %3710 = vmatprep.subr.bf16.mxu1 %v5088_v15  ;;  %v5160_v15 = vld [vmem:[%s7192_s3 + $0xcf4] ss:$28 sps:$4 sm:$0xff]  }
 0x16b   : > { %3620 = vmatmul.mubr.bf16.vlgmr.msra.gmra.mxu0 %v5898_v18 }
 0x16c   : > { %3661 = vmatmul.mubr.bf16.vlgmr.msra.gmra.mxu1 %v5902_v21  ;;  %3670 = vmatpush1.bf16.msra.mxu0 %v5083_v20  ;;  %v5155_v20 = vld [vmem:[%s7192_s3 + $0x970] ss:$28 sps:$4 sm:$0xff]  }
 0x16d   : > { %3701 = vmatprep.mubr.bf16.mxu0 %v5926_v39  ;;  %3711 = vmatpush1.bf16.msra.mxu1 %v5086_v22  ;;  %v5158_v22 = vld [vmem:[%s7192_s3 + $0xcf0] ss:$28 sps:$4 sm:$0xff]  }
 0x16e   : > { %3742 = vmatprep.mubr.bf16.mxu1 %v5934_v48  ;;  %3671 = vmatprep.subr.bf16.mxu0 %v5091_v23  ;;  %v5163_v23 = vld [vmem:[%s7192_s3 + $0x93c] ss:$28 sps:$4 sm:$0xff]  }
 0x16f   : > { %3712 = vmatprep.subr.bf16.mxu1 %v5094_v24  ;;  %v5166_v24 = vld [vmem:[%s7192_s3 + $0xcbc] ss:$28 sps:$4 sm:$0xff]  }
 0x170   : > { %3672 = vmatpush1.bf16.msra.mxu0 %v5089_v25  ;;  %v5161_v25 = vld [vmem:[%s7192_s3 + $0x938] ss:$28 sps:$4 sm:$0xff]  }
 0x171   : > { %3713 = vmatpush1.bf16.msra.mxu1 %v5092_v26  ;;  %3673 = vmatprep.subr.bf16.mxu0 %v5097_v28  ;;  %v5164_v26 = vld [vmem:[%s7192_s3 + $0xcb8] ss:$28 sps:$4 sm:$0xff]   ;;  %v5169_v28 = vld [vmem:[%s7192_s3 + $0x904] ss:$28 sps:$4 sm:$0xff]  }
 0x172   : > { %3714 = vmatprep.subr.bf16.mxu1 %v5100_v29  ;;  %v5172_v29 = vld [vmem:[%s7192_s3 + $0xc84] ss:$28 sps:$4 sm:$0xff]  }
 0x174   : > { %3674 = vmatpush1.bf16.msra.mxu0 %v5095_v31  ;;  %v5167_v31 = vld [vmem:[%s7192_s3 + $0x900] ss:$28 sps:$4 sm:$0xff]  }
 0x175   : > { %3715 = vmatpush1.bf16.msra.mxu1 %v5098_v32  ;;  %3675 = vmatprep.subr.bf16.mxu0 %v5103_v33  ;;  %v5170_v32 = vld [vmem:[%s7192_s3 + $0xc80] ss:$28 sps:$4 sm:$0xff]   ;;  %v5175_v33 = vld [vmem:[%s7192_s3 + $0x8cc] ss:$28 sps:$4 sm:$0xff]  }
 0x176   : > { %3716 = vmatprep.subr.bf16.mxu1 %v5106_v34  ;;  %v5178_v34 = vld [vmem:[%s7192_s3 + $0xc4c] ss:$28 sps:$4 sm:$0xff]  }
 0x178   : > { %3676 = vmatpush1.bf16.msra.mxu0 %v5101_v35  ;;  %v5173_v35 = vld [vmem:[%s7192_s3 + $0x8c8] ss:$28 sps:$4 sm:$0xff]  }
 0x179   : > { %3717 = vmatpush1.bf16.msra.mxu1 %v5104_v36  ;;  %3677 = vmatprep.subr.bf16.mxu0 %v5109_v37  ;;  %v5176_v36 = vld [vmem:[%s7192_s3 + $0xc48] ss:$28 sps:$4 sm:$0xff]   ;;  %v5181_v37 = vld [vmem:[%s7192_s3 + $0x19c] ss:$28 sps:$4 sm:$0xff]  }
 0x17a   : > { %3718 = vmatprep.subr.bf16.mxu1 %v5112_v38  ;;  %v5184_v38 = vld [vmem:[%s7192_s3 + $0x51c] ss:$28 sps:$4 sm:$0xff]  }
 0x17c   : > { %3678 = vmatpush1.bf16.msra.mxu0 %v5107_v40  ;;  %v5179_v40 = vld [vmem:[%s7192_s3 + $0x198] ss:$28 sps:$4 sm:$0xff]  }
 0x17d   : > { %3719 = vmatpush1.bf16.msra.mxu1 %v5110_v44  ;;  %3679 = vmatprep.subr.bf16.mxu0 %v5115_v41  ;;  %v5182_v44 = vld [vmem:[%s7192_s3 + $0x518] ss:$28 sps:$4 sm:$0xff]   ;;  %v5187_v41 = vld [vmem:[%s7192_s3 + $0x164] ss:$28 sps:$4 sm:$0xff]  }
 0x17e   : > { %3720 = vmatprep.subr.bf16.mxu1 %v5118_v49 }
 0x180   : > { %3680 = vmatpush1.bf16.msra.mxu0 %v5113_v14  ;;  %v5190_v14 = vld [vmem:[%s7192_s3 + $0x4e4] ss:$28 sps:$4 sm:$0xff]  }
 0x181   : > { %3721 = vmatpush1.bf16.msra.mxu1 %v5116_v50  ;;  %3681 = vmatprep.subr.bf16.mxu0 %v5121_v51  ;;  %v5185_v51 = vld [vmem:[%s7192_s3 + $0x160] ss:$28 sps:$4 sm:$0xff]  }
 0x182   : > { %3722 = vmatprep.subr.bf16.mxu1 %v5124_v17 }
 0x184   : > { %3682 = vmatpush1.bf16.msra.mxu0 %v5119_v52  ;;  %v5188_v52 = vld [vmem:[%s7192_s3 + $0x4e0] ss:$28 sps:$4 sm:$0xff]  }
 0x185   : > { %3723 = vmatpush1.bf16.msra.mxu1 %v5122_v53  ;;  %3683 = vmatprep.subr.bf16.mxu0 %v5127_v54  ;;  %v5193_v53 = vld [vmem:[%s7192_s3 + $0x12c] ss:$28 sps:$4 sm:$0xff]  }
 0x186   : > { %3724 = vmatprep.subr.bf16.mxu1 %v5130_v55  ;;  %v5196_v55 = vld [vmem:[%s7192_s3 + $0x4ac] ss:$28 sps:$4 sm:$0xff]  }
 0x188   : > { %3684 = vmatpush1.bf16.msra.mxu0 %v5125_v56 }
 0x189   : > { %3725 = vmatpush1.bf16.msra.mxu1 %v5128_v57  ;;  %3685 = vmatprep.subr.bf16.mxu0 %v5133_v58  ;;  %v5191_v58 = vld [vmem:[%s7192_s3 + $0x128] ss:$28 sps:$4 sm:$0xff]  }
 0x18a   : > { %3726 = vmatprep.subr.bf16.mxu1 %v5136_v59 }
 0x18c   : > { %3686 = vmatpush2.bf16.msra.mxu0 %v5131_v61  ;;  %v5194_v61 = vld [vmem:[%s7192_s3 + $0x4a8] ss:$28 sps:$4 sm:$0xff]  }
 0x18d   : > { %3727 = vmatpush2.bf16.msra.mxu1 %v5134_v63  ;;  %3687 = vmatprep.subr.bf16.mxu0 %v5139_v1  ;;  %v5199_v63 = vld [vmem:[%s7192_s3 + $0xf4] ss:$28 sps:$4 sm:$0xff]  }
 0x18e   : > { %3728 = vmatprep.subr.bf16.mxu1 %v5142_v2  ;;  %v5202_v2 = vld [vmem:[%s7192_s3 + $0x474] ss:$28 sps:$4 sm:$0xff]  }
 0x190   : > { %3688 = vmatpush2.bf16.msra.mxu0 %v5137_v3  ;;  %v5197_v3 = vld [vmem:[%s7192_s3 + $0xf0] ss:$28 sps:$4 sm:$0xff]  }
 0x191   : > { %3729 = vmatpush2.bf16.msra.mxu1 %v5140_v4  ;;  %3689 = vmatprep.subr.bf16.mxu0 %v5145_v5  ;;  %v5200_v4 = vld [vmem:[%s7192_s3 + $0x470] ss:$28 sps:$4 sm:$0xff]   ;;  %v5205_v5 = vld [vmem:[%s7192_s3 + $0xbc] ss:$28 sps:$4 sm:$0xff]  }
 0x192   : > { %3730 = vmatprep.subr.bf16.mxu1 %v5148_v6  ;;  %v5208_v6 = vld [vmem:[%s7192_s3 + $0x43c] ss:$28 sps:$4 sm:$0xff]  }
 0x194   : > { %3690 = vmatpush2.bf16.msra.mxu0 %v5143_v7  ;;  %v5203_v7 = vld [vmem:[%s7192_s3 + $0xb8] ss:$28 sps:$4 sm:$0xff]  }
 0x195   : > { %3731 = vmatpush2.bf16.msra.mxu1 %v5146_v8  ;;  %3691 = vmatprep.subr.bf16.mxu0 %v5151_v9  ;;  %v5206_v8 = vld [vmem:[%s7192_s3 + $0x438] ss:$28 sps:$4 sm:$0xff]   ;;  %v5211_v9 = vld [vmem:[%s7192_s3 + $0x84] ss:$28 sps:$4 sm:$0xff]  }
 0x196   : > { %3732 = vmatprep.subr.bf16.mxu1 %v5154_v10  ;;  %v5214_v10 = vld [vmem:[%s7192_s3 + $0x404] ss:$28 sps:$4 sm:$0xff]  }
 0x198   : > { %3692 = vmatpush2.bf16.msra.mxu0 %v5149_v11  ;;  %v5209_v11 = vld [vmem:[%s7192_s3 + $0x80] ss:$28 sps:$4 sm:$0xff]  }
 0x199   : > { %3733 = vmatpush2.bf16.msra.mxu1 %v5152_v12  ;;  %3693 = vmatprep.subr.bf16.mxu0 %v5157_v13  ;;  %v5212_v12 = vld [vmem:[%s7192_s3 + $0x400] ss:$28 sps:$4 sm:$0xff]   ;;  %v5217_v13 = vld [vmem:[%s7192_s3 + $0x4c] ss:$28 sps:$4 sm:$0xff]  }
 0x19a   : > { %3734 = vmatprep.subr.bf16.mxu1 %v5160_v15  ;;  %v5220_v15 = vld [vmem:[%s7192_s3 + $0x3cc] ss:$28 sps:$4 sm:$0xff]  }
 0x19c   : > { %3694 = vmatpush2.bf16.msra.mxu0 %v5155_v20  ;;  %v5215_v20 = vld [vmem:[%s7192_s3 + $0x48] ss:$28 sps:$4 sm:$0xff]  }
 0x19d   : > { %3735 = vmatpush2.bf16.msra.mxu1 %v5158_v22  ;;  %3695 = vmatprep.subr.bf16.mxu0 %v5163_v23  ;;  %v5218_v22 = vld [vmem:[%s7192_s3 + $0x3c8] ss:$28 sps:$4 sm:$0xff]   ;;  %v5223_v23 = vld [vmem:[%s7192_s3 + $0x14] ss:$28 sps:$4 sm:$0xff]  }
 0x19e   : > { %3736 = vmatprep.subr.bf16.mxu1 %v5166_v24  ;;  %v5226_v24 = vld [vmem:[%s7192_s3 + $0x394] ss:$28 sps:$4 sm:$0xff]  }
 0x1a0   : > { %3696 = vmatpush2.bf16.msra.mxu0 %v5161_v25  ;;  %v5221_v25 = vld [vmem:[%s7192_s3 + $0x10] ss:$28 sps:$4 sm:$0xff]  }
 0x1a1   : > { %3737 = vmatpush2.bf16.msra.mxu1 %v5164_v26  ;;  %3697 = vmatprep.subr.bf16.mxu0 %v5169_v28  ;;  %v5224_v26 = vld [vmem:[%s7192_s3 + $0x390] ss:$28 sps:$4 sm:$0xff]   ;;  %v5229_v28 = vld [vmem:[%s7192_s3 + $0x35c] ss:$28 sps:$4 sm:$0xff]  }
 0x1a2   : > { %3738 = vmatprep.subr.bf16.mxu1 %v5172_v29  ;;  %v5232_v29 = vld [vmem:[%s7192_s3 + $0x6dc] ss:$28 sps:$4 sm:$0xff]  }
 0x1a4   : > { %3698 = vmatpush2.bf16.msra.mxu0 %v5167_v31  ;;  %v5227_v31 = vld [vmem:[%s7192_s3 + $0x358] ss:$28 sps:$4 sm:$0xff]  }
 0x1a5   : > { %3739 = vmatpush2.bf16.msra.mxu1 %v5170_v32  ;;  %3699 = vmatprep.subr.bf16.mxu0 %v5175_v33  ;;  %v5230_v32 = vld [vmem:[%s7192_s3 + $0x6d8] ss:$28 sps:$4 sm:$0xff]   ;;  %v5235_v33 = vld [vmem:[%s7192_s3 + $0x324] ss:$28 sps:$4 sm:$0xff]  }
 0x1a6   : > { %3740 = vmatprep.subr.bf16.mxu1 %v5178_v34  ;;  %v5238_v34 = vld [vmem:[%s7192_s3 + $0x6a4] ss:$28 sps:$4 sm:$0xff]  }
 0x1a8   : > { %3700 = vmatpush2.bf16.msra.mxu0 %v5173_v35  ;;  %v5233_v35 = vld [vmem:[%s7192_s3 + $0x320] ss:$28 sps:$4 sm:$0xff]  }
 0x1a9   : > { %3741 = vmatpush2.bf16.msra.mxu1 %v5176_v36  ;;  %3751 = vmatprep.subr.bf16.mxu0 %v5181_v37  ;;  %v5236_v36 = vld [vmem:[%s7192_s3 + $0x6a0] ss:$28 sps:$4 sm:$0xff]   ;;  %v5241_v37 = vld [vmem:[%s7192_s3 + $0x2ec] ss:$28 sps:$4 sm:$0xff]  }
 0x1aa   : > { %3792 = vmatprep.subr.bf16.mxu1 %v5184_v38  ;;  %v5244_v38 = vld [vmem:[%s7192_s3 + $0x66c] ss:$28 sps:$4 sm:$0xff]  }
 0x1ab   : > { %3702 = vmatmul.mubr.bf16.vlgmr.msra.gmra.mxu0 %v6110_v62  ;;  %v6513_v49 = vpop.f32.mrf.mxu0  ;;  %v6519_v50 = vpop.f32.mrf.mxu1 }
 0x1ac   : > { %3743 = vmatmul.mubr.bf16.vlgmr.msra.gmra.mxu1 %v6115_v0  ;;  %3752 = vmatpush1.bf16.msra.mxu0 %v5179_v40  ;;  %v5239_v40 = vld [vmem:[%s7192_s3 + $0x2e8] ss:$28 sps:$4 sm:$0xff]  }
 0x1ad   : > { %3783 = vmatprep.mubr.bf16.mxu0 %v5894_v16  ;;  %3793 = vmatpush1.bf16.msra.mxu1 %v5182_v44  ;;  %v6525_v17 = vpop.f32.mrf.mxu0  ;;  %v6534_v54 = vpop.f32.mrf.mxu1  ;;  %v5242_v44 = vld [vmem:[%s7192_s3 + $0x668] ss:$28 sps:$4 sm:$0xff]  }
 0x1ae   : > { %3824 = vmatprep.mubr.bf16.mxu1 %v5900_v19  ;;  %3753 = vmatprep.subr.bf16.mxu0 %v5187_v41  ;;  %v5247_v41 = vld [vmem:[%s7192_s3 + $0x2b4] ss:$28 sps:$4 sm:$0xff]  }
 0x1af   : > { %3794 = vmatprep.subr.bf16.mxu1 %v5190_v14  ;;  %v3461_v56 = vpop.f32.mrf.mxu0  ;;  %v3502_v57 = vpop.f32.mrf.mxu1  ;;  %v5250_v14 = vld [vmem:[%s7192_s3 + $0x634] ss:$28 sps:$4 sm:$0xff]  }
 0x1b0   : > { %3754 = vmatpush1.bf16.msra.mxu0 %v5185_v51  ;;  %v5245_v51 = vld [vmem:[%s7192_s3 + $0x2b0] ss:$28 sps:$4 sm:$0xff]   ;;  %v5251_v56 = vld [vmem:[%s7192_s3 + $0x278] ss:$28 sps:$4 sm:$0xff]  }
 0x1b1   : > { %3795 = vmatpush1.bf16.msra.mxu1 %v5188_v52  ;;  %v3462_v59 = vpop.f32.mrf.mxu0  ;;  %3755 = vmatprep.subr.bf16.mxu0 %v5193_v53  ;;  %v3503_v1 = vpop.f32.mrf.mxu1  ;;  %v5248_v52 = vld [vmem:[%s7192_s3 + $0x630] ss:$28 sps:$4 sm:$0xff]   ;;  %v5253_v53 = vld [vmem:[%s7192_s3 + $0x27c] ss:$28 sps:$4 sm:$0xff]  }
 0x1b2   : > { %3796 = vmatprep.subr.bf16.mxu1 %v5196_v55  ;;  %v5256_v55 = vld [vmem:[%s7192_s3 + $0x5fc] ss:$28 sps:$4 sm:$0xff]   ;;  %v5262_v59 = vld [vmem:[%s7192_s3 + $0x5c4] ss:$28 sps:$4 sm:$0xff]   ;;  %v5265_v1 = vld [vmem:[%s7192_s3 + $0x20c] ss:$28 sps:$4 sm:$0xff]  }
 0x1b3   : > { %v5254_v57 = vld [vmem:[%s7192_s3 + $0x5f8] ss:$28 sps:$4 sm:$0xff]  }
 0x1b4   : > { %3756 = vmatpush1.bf16.msra.mxu0 %v5191_v58  ;;  %v5259_v58 = vld [vmem:[%s7192_s3 + $0x244] ss:$28 sps:$4 sm:$0xff]  }
 0x1b5   : > { %3797 = vmatpush1.bf16.msra.mxu1 %v5194_v61  ;;  %3757 = vmatprep.subr.bf16.mxu0 %v5199_v63  ;;  %v5257_v61 = vld [vmem:[%s7192_s3 + $0x240] ss:$28 sps:$4 sm:$0xff]  }
 0x1b6   : > { %3798 = vmatprep.subr.bf16.mxu1 %v5202_v2  ;;  %v5260_v63 = vld [vmem:[%s7192_s3 + $0x5c0] ss:$28 sps:$4 sm:$0xff]   ;;  %v5268_v2 = vld [vmem:[%s7192_s3 + $0x58c] ss:$28 sps:$4 sm:$0xff]  }
 0x1b8   : > { %3758 = vmatpush1.bf16.msra.mxu0 %v5197_v3  ;;  %v6686_v3 = vld [vmem:[%s7193_s4] sm:$0x7f] }
 0x1b9   : > { %3799 = vmatpush1.bf16.msra.mxu1 %v5200_v4  ;;  %3759 = vmatprep.subr.bf16.mxu0 %v5205_v5  ;;  %v5263_v4 = vld [vmem:[%s7192_s3 + $0x208] ss:$28 sps:$4 sm:$0xff]  }
 0x1ba   : > { %3800 = vmatprep.subr.bf16.mxu1 %v5208_v6  ;;  %v5266_v5 = vld [vmem:[%s7192_s3 + $0x588] ss:$28 sps:$4 sm:$0xff]   ;;  %v5271_v6 = vld [vmem:[%s7192_s3 + $0x1d4] ss:$28 sps:$4 sm:$0xff]  }
 0x1bc   : > { %3760 = vmatpush1.bf16.msra.mxu0 %v5203_v7  ;;  %v1087_v7 = vrot.slane %v6686_v3, %v243_v43  ;;  %v5272_v43 = vld [vmem:[%s7192_s3 + $0x550] ss:$28 sps:$4 sm:$0xff]  }
 0x1bd   : > { %3801 = vmatpush1.bf16.msra.mxu1 %v5206_v8  ;;  %3761 = vmatprep.subr.bf16.mxu0 %v5211_v9  ;;  %v5274_v8 = vld [vmem:[%s7192_s3 + $0x554] ss:$28 sps:$4 sm:$0xff]   ;;  %v1091_v9 = vrot.slane %v6686_v3, %v247_v46  ;;  %v5280_v46 = vld [vmem:[%s7192_s3 + $0xc1c] ss:$28 sps:$4 sm:$0xff]  }
 0x1be   : > { %3802 = vmatprep.subr.bf16.mxu1 %v5214_v10  ;;  %v5269_v10 = vld [vmem:[%s7192_s3 + $0x1d0] ss:$28 sps:$4 sm:$0xff]  }
 0x1c0   : > { %3762 = vmatpush1.bf16.msra.mxu0 %v5209_v11  ;;  %v5277_v11 = vld [vmem:[%s7192_s3 + $0x89c] ss:$28 sps:$4 sm:$0xff]  }
 0x1c1   : > { %3803 = vmatpush1.bf16.msra.mxu1 %v5212_v12  ;;  %3763 = vmatprep.subr.bf16.mxu0 %v5217_v13  ;;  %v3458_v12 = vadd.f32 %v6513_v49, %v1087_v7  ;;  %v3460_v13 = vadd.f32 %v6525_v17, %v1091_v9  ;;  %v5286_v17 = vld [vmem:[%s7192_s3 + $0xbe4] ss:$28 sps:$4 sm:$0xff]  }
 0x1c2   : > { %3804 = vmatprep.subr.bf16.mxu1 %v5220_v15  ;;  %v5275_v15 = vld [vmem:[%s7192_s3 + $0x898] ss:$28 sps:$4 sm:$0xff]   ;;  %v5311_v9 = vld [vmem:[%s7192_s3 + $0x748] ss:$28 sps:$4 sm:$0xff]  }
 0x1c3   : > { %v3499_v49 = vadd.f32 %v6519_v50, %v3458_v12  ;;  %v5281_v50 = vld [vmem:[%s7192_s3 + $0x860] ss:$28 sps:$4 sm:$0xff]  }
 0x1c4   : > { %3764 = vmatpush1.bf16.msra.mxu0 %v5215_v20  ;;  %v5278_v20 = vld [vmem:[%s7192_s3 + $0xc18] ss:$28 sps:$4 sm:$0xff]  }
 0x1c5   : > { %3805 = vmatpush1.bf16.msra.mxu1 %v5218_v22  ;;  %3765 = vmatprep.subr.bf16.mxu0 %v5223_v23  ;;  %v5283_v22 = vld [vmem:[%s7192_s3 + $0x864] ss:$28 sps:$4 sm:$0xff]  }
 0x1c6   : > { %3806 = vmatprep.subr.bf16.mxu1 %v5226_v24  ;;  %v3501_v24 = vadd.f32 %v6534_v54, %v3460_v13  ;;  %v5289_v54 = vld [vmem:[%s7192_s3 + $0x82c] ss:$28 sps:$4 sm:$0xff]   ;;  %v5322_v13 = vld [vmem:[%s7192_s3 + $0xa94] ss:$28 sps:$4 sm:$0xff]  }
 0x1c8   : > { %3766 = vmatpush1.bf16.msra.mxu0 %v5221_v25 }
 0x1c9   : > { %3807 = vmatpush1.bf16.msra.mxu1 %v5224_v26  ;;  %3767 = vmatprep.subr.bf16.mxu0 %v5229_v28 }
 0x1ca   : > { %3808 = vmatprep.subr.bf16.mxu1 %v5232_v29  ;;  %v5284_v29 = vld [vmem:[%s7192_s3 + $0xbe0] ss:$28 sps:$4 sm:$0xff]  }
 0x1cc   : > { %3768 = vmatpush2.bf16.msra.mxu0 %v5227_v31 }
 0x1cd   : > { %3809 = vmatpush2.bf16.msra.mxu1 %v5230_v32  ;;  %3769 = vmatprep.subr.bf16.mxu0 %v5235_v33 }
 0x1ce   : > { %3810 = vmatprep.subr.bf16.mxu1 %v5238_v34  ;;  %v5292_v34 = vld [vmem:[%s7192_s3 + $0xbac] ss:$28 sps:$4 sm:$0xff]  }
 0x1d0   : > { %3770 = vmatpush2.bf16.msra.mxu0 %v5233_v35 }
 0x1d1   : > { %3811 = vmatpush2.bf16.msra.mxu1 %v5236_v36  ;;  %3771 = vmatprep.subr.bf16.mxu0 %v5241_v37 }
 0x1d2   : > { %3812 = vmatprep.subr.bf16.mxu1 %v5244_v38 }
 0x1d4   : > { %3772 = vmatpush2.bf16.msra.mxu0 %v5239_v40  ;;  %v5287_v40 = vld [vmem:[%s7192_s3 + $0x828] ss:$28 sps:$4 sm:$0xff]  }
 0x1d5   : > { %3813 = vmatpush2.bf16.msra.mxu1 %v5242_v44  ;;  %3773 = vmatprep.subr.bf16.mxu0 %v5247_v41  ;;  %v5290_v41 = vld [vmem:[%s7192_s3 + $0xba8] ss:$28 sps:$4 sm:$0xff]  }
 0x1d6   : > { %3814 = vmatprep.subr.bf16.mxu1 %v5250_v14  ;;  %v5295_v14 = vld [vmem:[%s7192_s3 + $0x7f4] ss:$28 sps:$4 sm:$0xff]  }
 0x1d8   : > { %3774 = vmatpush2.bf16.msra.mxu0 %v5245_v51 }
 0x1d9   : > { %3815 = vmatpush2.bf16.msra.mxu1 %v5248_v52  ;;  %3775 = vmatprep.subr.bf16.mxu0 %v5253_v53  ;;  %v5298_v53 = vld [vmem:[%s7192_s3 + $0xb74] ss:$28 sps:$4 sm:$0xff]  }
 0x1da   : > { %3816 = vmatprep.subr.bf16.mxu1 %v5256_v55  ;;  %v5293_v55 = vld [vmem:[%s7192_s3 + $0x7f0] ss:$28 sps:$4 sm:$0xff]  }
 0x1dc   : > { %3776 = vmatpush2.bf16.msra.mxu0 %v5251_v56  ;;  %v5296_v56 = vld [vmem:[%s7192_s3 + $0xb70] ss:$28 sps:$4 sm:$0xff]  }
 0x1dd   : > { %3817 = vmatpush2.bf16.msra.mxu1 %v5254_v57  ;;  %3777 = vmatprep.subr.bf16.mxu0 %v5259_v58  ;;  %v5301_v57 = vld [vmem:[%s7192_s3 + $0x7bc] ss:$28 sps:$4 sm:$0xff]  }
 0x1de   : > { %3818 = vmatprep.subr.bf16.mxu1 %v5262_v59  ;;  %v5304_v58 = vld [vmem:[%s7192_s3 + $0xb3c] ss:$28 sps:$4 sm:$0xff]  }
 0x1df   : > { %v5299_v59 = vld [vmem:[%s7192_s3 + $0x7b8] ss:$28 sps:$4 sm:$0xff]  }
 0x1e0   : > { %3778 = vmatpush2.bf16.msra.mxu0 %v5257_v61  ;;  %v5302_v61 = vld [vmem:[%s7192_s3 + $0xb38] ss:$28 sps:$4 sm:$0xff]  }
 0x1e1   : > { %3819 = vmatpush2.bf16.msra.mxu1 %v5260_v63  ;;  %3779 = vmatprep.subr.bf16.mxu0 %v5265_v1  ;;  %v5307_v63 = vld [vmem:[%s7192_s3 + $0x784] ss:$28 sps:$4 sm:$0xff]  }
 0x1e2   : > { %3820 = vmatprep.subr.bf16.mxu1 %v5268_v2  ;;  %v5310_v1 = vld [vmem:[%s7192_s3 + $0xb04] ss:$28 sps:$4 sm:$0xff]  }
 0x1e3   : > { %v5305_v2 = vld [vmem:[%s7192_s3 + $0x780] ss:$28 sps:$4 sm:$0xff]  }
 0x1e4   : > { %3780 = vmatpush2.bf16.msra.mxu0 %v5263_v4  ;;  %v5308_v4 = vld [vmem:[%s7192_s3 + $0xb00] ss:$28 sps:$4 sm:$0xff]  }
 0x1e5   : > { %3821 = vmatpush2.bf16.msra.mxu1 %v5266_v5  ;;  %3781 = vmatprep.subr.bf16.mxu0 %v5271_v6  ;;  %v5313_v5 = vld [vmem:[%s7192_s3 + $0x74c] ss:$28 sps:$4 sm:$0xff]  }
 0x1e6   : > { %3822 = vmatprep.subr.bf16.mxu1 %v5274_v8  ;;  %v5316_v6 = vld [vmem:[%s7192_s3 + $0xacc] ss:$28 sps:$4 sm:$0xff]  }
 0x1e8   : > { %3782 = vmatpush2.bf16.msra.mxu0 %v5269_v10 }
 0x1e9   : > { %3823 = vmatpush2.bf16.msra.mxu1 %v5272_v43  ;;  %3833 = vmatprep.subr.bf16.mxu0 %v5277_v11  ;;  %v5314_v43 = vld [vmem:[%s7192_s3 + $0xac8] ss:$28 sps:$4 sm:$0xff]   ;;  %v5319_v11 = vld [vmem:[%s7192_s3 + $0x714] ss:$28 sps:$4 sm:$0xff]  }
 0x1ea   : > { %3874 = vmatprep.subr.bf16.mxu1 %v5280_v46 }
 0x1eb   : > { %v3539_v23 = vpop.f32.mrf.mxu0  ;;  %3784 = vmatmul.mubr.bf16.vlgmr.msra.gmra.mxu0 %v5898_v18  ;;  %v3580_v26 = vpop.f32.mrf.mxu1 }
 0x1ec   : > { %v3540_v25 = vadd.f32 %v3539_v23, %v3499_v49  ;;  %3825 = vmatmul.mubr.bf16.vlgmr.msra.gmra.mxu1 %v5902_v21  ;;  %3834 = vmatpush1.bf16.msra.mxu0 %v5275_v15  ;;  %v5320_v49 = vld [vmem:[%s7192_s3 + $0xa90] ss:$28 sps:$4 sm:$0xff]   ;;  %v5328_v23 = vld [vmem:[%s7192_s3 + $0xddc] ss:$28 sps:$4 sm:$0xff]  }
 0x1ed   : > { %3865 = vmatprep.mubr.bf16.mxu0 %v5926_v39  ;;  %3875 = vmatpush1.bf16.msra.mxu1 %v5278_v20  ;;  %v3541_v28 = vpop.f32.mrf.mxu0  ;;  %v3582_v33 = vpop.f32.mrf.mxu1  ;;  %v5317_v20 = vld [vmem:[%s7192_s3 + $0x710] ss:$28 sps:$4 sm:$0xff]  }
 0x1ee   : > { %v3581_v31 = vadd.f32 %v3580_v26, %v3540_v25  ;;  %3906 = vmatprep.mubr.bf16.mxu1 %v5934_v48  ;;  %v3542_v32 = vadd.f32 %v3541_v28, %v3501_v24  ;;  %3835 = vmatprep.subr.bf16.mxu0 %v5283_v22  ;;  %v5325_v22 = vld [vmem:[%s7192_s3 + $0xa5c] ss:$28 sps:$4 sm:$0xff]   ;;  %v5331_v25 = vld [vmem:[%s7192_s3 + $0xa24] ss:$28 sps:$4 sm:$0xff]  }
 0x1ef   : > { %v3543_v35 = vpop.f32.mrf.mxu0  ;;  %3876 = vmatprep.subr.bf16.mxu1 %v5286_v17  ;;  %v3584_v38 = vpop.f32.mrf.mxu1  ;;  %v5323_v17 = vld [vmem:[%s7192_s3 + $0xa58] ss:$28 sps:$4 sm:$0xff]   ;;  %v5334_v26 = vld [vmem:[%s7192_s3 + $0xda4] ss:$28 sps:$4 sm:$0xff]  }
 0x1f0   : > { %v4075_v36 = vmul.f32 0.5, %v3581_v31  ;;  %v3583_v37 = vadd.f32 %v3582_v33, %v3542_v32  ;;  %3836 = vmatpush1.bf16.msra.mxu0 %v5281_v50  ;;  %v5326_v24 = vld [vmem:[%s7192_s3 + $0xdd8] ss:$28 sps:$4 sm:$0xff]   ;;  %v5329_v50 = vld [vmem:[%s7192_s3 + $0xa20] ss:$28 sps:$4 sm:$0xff]  }
 0x1f1   : > { %3877 = vmatpush1.bf16.msra.mxu1 %v5284_v29  ;;  %v3544_v44 = vpop.f32.mrf.mxu0  ;;  %3837 = vmatprep.subr.bf16.mxu0 %v5289_v54  ;;  %v3585_v52 = vpop.f32.mrf.mxu1  ;;  %v5332_v28 = vld [vmem:[%s7192_s3 + $0xda0] ss:$28 sps:$4 sm:$0xff]   ;;  %v5337_v29 = vld [vmem:[%s7192_s3 + $0x9ec] ss:$28 sps:$4 sm:$0xff]   ;;  %v5343_v33 = vld [vmem:[%s7192_s3 + $0x9b4] ss:$28 sps:$4 sm:$0xff]  }
 0x1f2   : > { %5435 = vtanh.f32 %v4075_v36  ;;  %v4076_v51 = vmul.f32 0.5, %v3583_v37  ;;  %3878 = vmatprep.subr.bf16.mxu1 %v5292_v34  ;;  %v5340_v54 = vld [vmem:[%s7192_s3 + $0xd6c] ss:$28 sps:$4 sm:$0xff]   ;;  %v5346_v34 = vld [vmem:[%s7192_s3 + $0xd34] ss:$28 sps:$4 sm:$0xff]  }
 0x1f3   : > { %v5335_v31 = vld [vmem:[%s7192_s3 + $0x9e8] ss:$28 sps:$4 sm:$0xff]   ;;  %v5341_v35 = vld [vmem:[%s7192_s3 + $0x9b0] ss:$28 sps:$4 sm:$0xff]   ;;  %v5349_v37 = vld [vmem:[%s7192_s3 + $0x97c] ss:$28 sps:$4 sm:$0xff]  }
 0x1f4   : > { %5437 = vtanh.f32 %v4076_v51  ;;  %3838 = vmatpush1.bf16.msra.mxu0 %v5287_v40  ;;  %v5338_v32 = vld [vmem:[%s7192_s3 + $0xd68] ss:$28 sps:$4 sm:$0xff]   ;;  %v5344_v36 = vld [vmem:[%s7192_s3 + $0xd30] ss:$28 sps:$4 sm:$0xff]   ;;  %v5352_v38 = vld [vmem:[%s7192_s3 + $0xcfc] ss:$28 sps:$4 sm:$0xff]  }
 0x1f5   : > { %3879 = vmatpush1.bf16.msra.mxu1 %v5290_v41  ;;  %3839 = vmatprep.subr.bf16.mxu0 %v5295_v14  ;;  %v5347_v40 = vld [vmem:[%s7192_s3 + $0x978] ss:$28 sps:$4 sm:$0xff]   ;;  %v5355_v41 = vld [vmem:[%s7192_s3 + $0x944] ss:$28 sps:$4 sm:$0xff]  }
 0x1f6   : > { %3880 = vmatprep.subr.bf16.mxu1 %v5298_v53  ;;  %v5350_v44 = vld [vmem:[%s7192_s3 + $0xcf8] ss:$28 sps:$4 sm:$0xff]   ;;  %v5358_v14 = vld [vmem:[%s7192_s3 + $0xcc4] ss:$28 sps:$4 sm:$0xff]   ;;  %v5361_v53 = vld [vmem:[%s7192_s3 + $0x90c] ss:$28 sps:$4 sm:$0xff]  }
 0x1f7   : > { %v5353_v51 = vld [vmem:[%s7192_s3 + $0x940] ss:$28 sps:$4 sm:$0xff]  }
 0x1f8   : > { %3840 = vmatpush1.bf16.msra.mxu0 %v5293_v55  ;;  %v5356_v52 = vld [vmem:[%s7192_s3 + $0xcc0] ss:$28 sps:$4 sm:$0xff]   ;;  %v5364_v55 = vld [vmem:[%s7192_s3 + $0xc8c] ss:$28 sps:$4 sm:$0xff]  }
 0x1f9   : > { %3881 = vmatpush1.bf16.msra.mxu1 %v5296_v56  ;;  %3841 = vmatprep.subr.bf16.mxu0 %v5301_v57  ;;  %v5359_v56 = vld [vmem:[%s7192_s3 + $0x908] ss:$28 sps:$4 sm:$0xff]  }
 0x1fa   : > { %3882 = vmatprep.subr.bf16.mxu1 %v5304_v58  ;;  %v5362_v57 = vld [vmem:[%s7192_s3 + $0xc88] ss:$28 sps:$4 sm:$0xff]   ;;  %v5367_v58 = vld [vmem:[%s7192_s3 + $0x8d4] ss:$28 sps:$4 sm:$0xff]  }
 0x1fc   : > { %3842 = vmatpush1.bf16.msra.mxu0 %v5299_v59  ;;  %v5370_v59 = vld [vmem:[%s7192_s3 + $0xc54] ss:$28 sps:$4 sm:$0xff]  }
 0x1fd   : > { %3883 = vmatpush1.bf16.msra.mxu1 %v5302_v61  ;;  %3843 = vmatprep.subr.bf16.mxu0 %v5307_v63  ;;  %v5365_v61 = vld [vmem:[%s7192_s3 + $0x8d0] ss:$28 sps:$4 sm:$0xff]  }
 0x1fe   : > { %3884 = vmatprep.subr.bf16.mxu1 %v5310_v1  ;;  %v5368_v63 = vld [vmem:[%s7192_s3 + $0xc50] ss:$28 sps:$4 sm:$0xff]   ;;  %v5371_v1 = vld [vmem:[%s7192_s3 + $0x360] ss:$28 sps:$4 sm:$0xff]  }
 0x1ff   : > { %v5436_v7 = vpop.eup %5435 }
 0x200   : > { %v4089_v8 = vmul.f32 0.5, %v5436_v7  ;;  %3844 = vmatpush1.bf16.msra.mxu0 %v5305_v2  ;;  %v5372_v2 = vld [vmem:[%s7192_s3 + $0x6e0] ss:$28 sps:$4 sm:$0xff]  }
 0x201   : > { %v5438_v10 = vpop.eup %5437  ;;  %3885 = vmatpush1.bf16.msra.mxu1 %v5308_v4  ;;  %3845 = vmatprep.subr.bf16.mxu0 %v5313_v5  ;;  %v5373_v4 = vld [vmem:[%s7192_s3 + $0x1a0] ss:$28 sps:$4 sm:$0xff]  }
 0x202   : > { %v4096_v12 = vadd.f32 0.5, %v4089_v8  ;;  %v4090_v46 = vmul.f32 0.5, %v5438_v10  ;;  %3886 = vmatprep.subr.bf16.mxu1 %v5316_v6  ;;  %v5374_v5 = vld [vmem:[%s7192_s3 + $0x520] ss:$28 sps:$4 sm:$0xff]   ;;  %v5375_v6 = vld [vmem:[%s7192_s3 + $0x328] ss:$28 sps:$4 sm:$0xff]  }
 0x203   : > { %v5376_v8 = vld [vmem:[%s7192_s3 + $0x6a8] ss:$28 sps:$4 sm:$0xff]  }
 0x204   : > { %4103 = vst [vmem:[%s6813_s14] sm:$0xff] %v4096_v12  ;;  %v4097_v15 = vadd.f32 0.5, %v4090_v46  ;;  %3846 = vmatpush1.bf16.msra.mxu0 %v5311_v9  ;;  %v5377_v10 = vld [vmem:[%s7192_s3 + $0x168] ss:$28 sps:$4 sm:$0xff]   ;;  %v5379_v12 = vld [vmem:[%s7192_s3 + $0x2f0] ss:$28 sps:$4 sm:$0xff]  }
 0x205   : > { %3887 = vmatpush1.bf16.msra.mxu1 %v5314_v43  ;;  %3847 = vmatprep.subr.bf16.mxu0 %v5319_v11  ;;  %v5378_v11 = vld [vmem:[%s7192_s3 + $0x4e8] ss:$28 sps:$4 sm:$0xff]  }
 0x206   : > { %4104 = vst [vmem:[%s6813_s14 + $0x8] sm:$0xff] %v4097_v15  ;;  %3888 = vmatprep.subr.bf16.mxu1 %v5322_v13 }
 0x208   : > { %3848 = vmatpush1.bf16.msra.mxu0 %v5317_v20  ;;  %v5381_v20 = vld [vmem:[%s7192_s3 + $0x130] ss:$28 sps:$4 sm:$0xff]  }
 0x209   : > { %3889 = vmatpush1.bf16.msra.mxu1 %v5320_v49  ;;  %3849 = vmatprep.subr.bf16.mxu0 %v5325_v22  ;;  %v5383_v22 = vld [vmem:[%s7192_s3 + $0x2b8] ss:$28 sps:$4 sm:$0xff]  }
 0x20a   : > { %3890 = vmatprep.subr.bf16.mxu1 %v5328_v23 }
 0x20c   : > { %3850 = vmatpush2.bf16.msra.mxu0 %v5323_v17  ;;  %v5384_v17 = vld [vmem:[%s7192_s3 + $0x638] ss:$28 sps:$4 sm:$0xff]  }
 0x20d   : > { %3891 = vmatpush2.bf16.msra.mxu1 %v5326_v24  ;;  %3851 = vmatprep.subr.bf16.mxu0 %v5331_v25  ;;  %v5385_v24 = vld [vmem:[%s7192_s3 + $0xf8] ss:$28 sps:$4 sm:$0xff]  }
 0x20e   : > { %3892 = vmatprep.subr.bf16.mxu1 %v5334_v26  ;;  %v5386_v25 = vld [vmem:[%s7192_s3 + $0x478] ss:$28 sps:$4 sm:$0xff]   ;;  %v5387_v26 = vld [vmem:[%s7192_s3 + $0x280] ss:$28 sps:$4 sm:$0xff]  }
 0x210   : > { %3852 = vmatpush2.bf16.msra.mxu0 %v5329_v50  ;;  %v5388_v50 = vld [vmem:[%s7192_s3 + $0x600] ss:$28 sps:$4 sm:$0xff]  }
 0x211   : > { %3893 = vmatpush2.bf16.msra.mxu1 %v5332_v28  ;;  %3853 = vmatprep.subr.bf16.mxu0 %v5337_v29  ;;  %v5389_v28 = vld [vmem:[%s7192_s3 + $0xc0] ss:$28 sps:$4 sm:$0xff]  }
 0x212   : > { %3894 = vmatprep.subr.bf16.mxu1 %v5340_v54  ;;  %v5390_v29 = vld [vmem:[%s7192_s3 + $0x440] ss:$28 sps:$4 sm:$0xff]   ;;  %v5391_v54 = vld [vmem:[%s7192_s3 + $0x248] ss:$28 sps:$4 sm:$0xff]  }
 0x214   : > { %3854 = vmatpush2.bf16.msra.mxu0 %v5335_v31  ;;  %v5392_v31 = vld [vmem:[%s7192_s3 + $0x5c8] ss:$28 sps:$4 sm:$0xff]  }
 0x215   : > { %3895 = vmatpush2.bf16.msra.mxu1 %v5338_v32  ;;  %3855 = vmatprep.subr.bf16.mxu0 %v5343_v33  ;;  %v5393_v32 = vld [vmem:[%s7192_s3 + $0x88] ss:$28 sps:$4 sm:$0xff]  }
 0x216   : > { %3896 = vmatprep.subr.bf16.mxu1 %v5346_v34  ;;  %v5394_v33 = vld [vmem:[%s7192_s3 + $0x408] ss:$28 sps:$4 sm:$0xff]   ;;  %v5395_v34 = vld [vmem:[%s7192_s3 + $0x210] ss:$28 sps:$4 sm:$0xff]  }
 0x218   : > { %3856 = vmatpush2.bf16.msra.mxu0 %v5341_v35  ;;  %v5396_v35 = vld [vmem:[%s7192_s3 + $0x590] ss:$28 sps:$4 sm:$0xff]  }
 0x219   : > { %3897 = vmatpush2.bf16.msra.mxu1 %v5344_v36  ;;  %3857 = vmatprep.subr.bf16.mxu0 %v5349_v37  ;;  %v5397_v36 = vld [vmem:[%s7192_s3 + $0x50] ss:$28 sps:$4 sm:$0xff]  }
 0x21a   : > { %3898 = vmatprep.subr.bf16.mxu1 %v5352_v38  ;;  %v5398_v37 = vld [vmem:[%s7192_s3 + $0x3d0] ss:$28 sps:$4 sm:$0xff]   ;;  %v5399_v38 = vld [vmem:[%s7192_s3 + $0x1d8] ss:$28 sps:$4 sm:$0xff]  }
 0x21c   : > { %3858 = vmatpush2.bf16.msra.mxu0 %v5347_v40  ;;  %v5400_v40 = vld [vmem:[%s7192_s3 + $0x558] ss:$28 sps:$4 sm:$0xff]  }
 0x21d   : > { %3899 = vmatpush2.bf16.msra.mxu1 %v5350_v44  ;;  %3859 = vmatprep.subr.bf16.mxu0 %v5355_v41  ;;  %v5401_v44 = vld [vmem:[%s7192_s3 + $0x18] ss:$28 sps:$4 sm:$0xff]  }
 0x21e   : > { %3900 = vmatprep.subr.bf16.mxu1 %v5358_v14  ;;  %v5402_v41 = vld [vmem:[%s7192_s3 + $0x398] ss:$28 sps:$4 sm:$0xff]   ;;  %v5403_v14 = vld [vmem:[%s7192_s3 + $0xa60] ss:$28 sps:$4 sm:$0xff]  }
 0x220   : > { %3860 = vmatpush2.bf16.msra.mxu0 %v5353_v51  ;;  %v5404_v51 = vld [vmem:[%s7192_s3 + $0xde0] ss:$28 sps:$4 sm:$0xff]  }
 0x221   : > { %3901 = vmatpush2.bf16.msra.mxu1 %v5356_v52  ;;  %3861 = vmatprep.subr.bf16.mxu0 %v5361_v53  ;;  %v5405_v52 = vld [vmem:[%s7192_s3 + $0x8a0] ss:$28 sps:$4 sm:$0xff]  }
 0x222   : > { %3902 = vmatprep.subr.bf16.mxu1 %v5364_v55  ;;  %v5406_v53 = vld [vmem:[%s7192_s3 + $0xc20] ss:$28 sps:$4 sm:$0xff]   ;;  %v5407_v55 = vld [vmem:[%s7192_s3 + $0xa28] ss:$28 sps:$4 sm:$0xff]  }
 0x224   : > { %3862 = vmatpush2.bf16.msra.mxu0 %v5359_v56  ;;  %v5408_v56 = vld [vmem:[%s7192_s3 + $0xda8] ss:$28 sps:$4 sm:$0xff]  }
 0x225   : > { %3903 = vmatpush2.bf16.msra.mxu1 %v5362_v57  ;;  %3863 = vmatprep.subr.bf16.mxu0 %v5367_v58  ;;  %v5409_v57 = vld [vmem:[%s7192_s3 + $0x868] ss:$28 sps:$4 sm:$0xff]  }
 0x226   : > { %3904 = vmatprep.subr.bf16.mxu1 %v5370_v59  ;;  %v5410_v58 = vld [vmem:[%s7192_s3 + $0xbe8] ss:$28 sps:$4 sm:$0xff]   ;;  %v5414_v59 = vld [vmem:[%s7192_s3 + $0xbb0] ss:$28 sps:$4 sm:$0xff]  }
 0x228   : > { %3864 = vmatpush2.bf16.msra.mxu0 %v5365_v61  ;;  %v5416_v61 = vld [vmem:[%s7192_s3 + $0xd38] ss:$28 sps:$4 sm:$0xff]  }
 0x229   : > { %3905 = vmatpush2.bf16.msra.mxu1 %v5368_v63  ;;  %4665 = vmatprep.subr.bf16.mxu0 %v5371_v1  ;;  %v5417_v63 = vld [vmem:[%s7192_s3 + $0x7f8] ss:$28 sps:$4 sm:$0xff]  }
 0x22a   : > { %4687 = vmatprep.subr.bf16.mxu1 %v5372_v2  ;;  %v5418_v1 = vld [vmem:[%s7192_s3 + $0xb78] ss:$28 sps:$4 sm:$0xff]   ;;  %v5419_v2 = vld [vmem:[%s7192_s3 + $0x980] ss:$28 sps:$4 sm:$0xff]  }
 0x22b   : > { %v6934_v7 = vpop.f32.mrf.mxu0  ;;  %3866 = vmatmul.mubr.bf16.vlgmr.msra.gmra.mxu0 %v6110_v62 }
 0x22c   : > { %v6940_v9 = vpop.f32.mrf.mxu1  ;;  %3907 = vmatmul.mubr.bf16.vlgmr.msra.gmra.mxu1 %v6115_v0  ;;  %4666 = vmatpush3.bf16.msra.mxu0 %v5373_v4  ;;  %v5420_v4 = vld [vmem:[%s7192_s3 + $0xd00] ss:$28 sps:$4 sm:$0xff]  }
 0x22d   : > { %3947 = vmatprep.mubr.bf16.mxu0 %v5894_v16  ;;  %4688 = vmatpush3.bf16.msra.mxu1 %v5374_v5  ;;  %v6947_v43 = vpop.f32.mrf.mxu0  ;;  %v5380_v16 = vld [vmem:[%s7192_s3 + $0x670] ss:$28 sps:$4 sm:$0xff]   ;;  %v5421_v5 = vld [vmem:[%s7192_s3 + $0x7c0] ss:$28 sps:$4 sm:$0xff]  }
 0x22e   : > { %3987 = vmatprep.mubr.bf16.mxu1 %v5900_v19  ;;  %v6956_v46 = vpop.f32.mrf.mxu1  ;;  %4667 = vmatprep.subr.bf16.mxu0 %v5375_v6  ;;  %v5382_v19 = vld [vmem:[%s7192_s3 + $0x4b0] ss:$28 sps:$4 sm:$0xff]   ;;  %v5422_v6 = vld [vmem:[%s7192_s3 + $0xb40] ss:$28 sps:$4 sm:$0xff]  }
 0x22f   : > { %v3625_v13 = vpop.f32.mrf.mxu0  ;;  %4689 = vmatprep.subr.bf16.mxu1 %v5376_v8  ;;  %v5423_v8 = vld [vmem:[%s7192_s3 + $0x948] ss:$28 sps:$4 sm:$0xff]  }
 0x230   : > { %v3666_v15 = vpop.f32.mrf.mxu1  ;;  %4668 = vmatpush3.bf16.msra.mxu0 %v5377_v10  ;;  %v5424_v10 = vld [vmem:[%s7192_s3 + $0xcc8] ss:$28 sps:$4 sm:$0xff]   ;;  %v5428_v13 = vld [vmem:[%s7192_s3 + $0xc90] ss:$28 sps:$4 sm:$0xff]  }
 0x231   : > { %4690 = vmatpush3.bf16.msra.mxu1 %v5378_v11  ;;  %v3626_v49 = vpop.f32.mrf.mxu0  ;;  %4669 = vmatprep.subr.bf16.mxu0 %v5379_v12  ;;  %v5425_v11 = vld [vmem:[%s7192_s3 + $0x788] ss:$28 sps:$4 sm:$0xff]   ;;  %v5429_v15 = vld [vmem:[%s7192_s3 + $0x750] ss:$28 sps:$4 sm:$0xff]  }
 0x232   : > { %v3667_v23 = vpop.f32.mrf.mxu1  ;;  %4691 = vmatprep.subr.bf16.mxu1 %v5380_v16  ;;  %v5426_v12 = vld [vmem:[%s7192_s3 + $0xb08] ss:$28 sps:$4 sm:$0xff]   ;;  %v5427_v16 = vld [vmem:[%s7192_s3 + $0x910] ss:$28 sps:$4 sm:$0xff]   ;;  %v5431_v49 = vld [vmem:[%s7192_s3 + $0x8d8] ss:$28 sps:$4 sm:$0xff]  }
 0x233   : > { %v1099_v23 = vrot.slane %v6686_v3, %v255_v47 }
 0x234   : > { %4670 = vmatpush3.bf16.msra.mxu0 %v5381_v20  ;;  %v5430_v20 = vld [vmem:[%s7192_s3 + $0xad0] ss:$28 sps:$4 sm:$0xff]  }
 0x235   : > { %4692 = vmatpush3.bf16.msra.mxu1 %v5382_v19  ;;  %4671 = vmatprep.subr.bf16.mxu0 %v5383_v22  ;;  %v1095_v19 = vrot.slane %v6686_v3, %v251_v45  ;;  %v5432_v22 = vld [vmem:[%s7192_s3 + $0xc58] ss:$28 sps:$4 sm:$0xff]  }
 0x236   : > { %4693 = vmatprep.subr.bf16.mxu1 %v5384_v17  ;;  %v5433_v17 = vld [vmem:[%s7192_s3 + $0x718] ss:$28 sps:$4 sm:$0xff]  }
 0x237   : > { %v5434_v45 = vld [vmem:[%s7192_s3 + $0xa98] ss:$28 sps:$4 sm:$0xff]  }
 0x238   : > { %4672 = vmatpush3.bf16.msra.mxu0 %v5385_v24  ;;  %v3622_v24 = vadd.f32 %v6934_v7, %v1095_v19 }
 0x239   : > { %4694 = vmatpush3.bf16.msra.mxu1 %v5386_v25  ;;  %4673 = vmatprep.subr.bf16.mxu0 %v5387_v26  ;;  %v3624_v25 = vadd.f32 %v6947_v43, %v1099_v23 }
 0x23a   : > { %4695 = vmatprep.subr.bf16.mxu1 %v5388_v50  ;;  %v3663_v47 = vadd.f32 %v6940_v9, %v3622_v24 }
 0x23b   : > { %v3665_v50 = vadd.f32 %v6956_v46, %v3624_v25 }
 0x23c   : > { %4674 = vmatpush3.bf16.msra.mxu0 %v5389_v28 }
 0x23d   : > { %4696 = vmatpush3.bf16.msra.mxu1 %v5390_v29  ;;  %4675 = vmatprep.subr.bf16.mxu0 %v5391_v54 }
 0x23e   : > { %4697 = vmatprep.subr.bf16.mxu1 %v5392_v31 }
 0x240   : > { %4676 = vmatpush3.bf16.msra.mxu0 %v5393_v32 }
 0x241   : > { %4698 = vmatpush3.bf16.msra.mxu1 %v5394_v33  ;;  %4677 = vmatprep.subr.bf16.mxu0 %v5395_v34 }
 0x242   : > { %4699 = vmatprep.subr.bf16.mxu1 %v5396_v35 }
 0x244   : > { %4678 = vmatpush3.bf16.msra.mxu0 %v5397_v36 }
 0x245   : > { %4700 = vmatpush3.bf16.msra.mxu1 %v5398_v37  ;;  %4679 = vmatprep.subr.bf16.mxu0 %v5399_v38 }
 0x246   : > { %4701 = vmatprep.subr.bf16.mxu1 %v5400_v40 }
 0x248   : > { %4680 = vmatpush3.bf16.msra.mxu0 %v5401_v44 }
 0x249   : > { %4702 = vmatpush3.bf16.msra.mxu1 %v5402_v41  ;;  %4709 = vmatprep.subr.bf16.mxu0 %v5403_v14 }
 0x24a   : > { %4731 = vmatprep.subr.bf16.mxu1 %v5404_v51 }
 0x24b   : > { %3948 = vmatmul.mubr.bf16.vlgmr.msra.gmra.mxu0 %v5898_v18  ;;  %v5411_v18 = vld [vmem:[%s7192_s3 + $0x9f0] ss:$28 sps:$4 sm:$0xff]  }
 0x24c   : > { %3988 = vmatmul.mubr.bf16.vlgmr.msra.gmra.mxu1 %v5902_v21  ;;  %4710 = vmatpush3.bf16.msra.mxu0 %v5405_v52  ;;  %v5412_v21 = vld [vmem:[%s7192_s3 + $0xd70] ss:$28 sps:$4 sm:$0xff]  }
 0x24d   : > { %4027 = vmatprep.mubr.bf16.mxu0 %v5926_v39  ;;  %4732 = vmatpush3.bf16.msra.mxu1 %v5406_v53  ;;  %v5413_v39 = vld [vmem:[%s7192_s3 + $0x830] ss:$28 sps:$4 sm:$0xff]  }
 0x24e   : > { %4067 = vmatprep.mubr.bf16.mxu1 %v5934_v48  ;;  %4711 = vmatprep.subr.bf16.mxu0 %v5407_v55  ;;  %v5415_v48 = vld [vmem:[%s7192_s3 + $0x9b8] ss:$28 sps:$4 sm:$0xff]  }
 0x24f   : > { %4733 = vmatprep.subr.bf16.mxu1 %v5408_v56 }
 0x250   : > { %4712 = vmatpush3.bf16.msra.mxu0 %v5409_v57 }
 0x251   : > { %4734 = vmatpush3.bf16.msra.mxu1 %v5410_v58  ;;  %4713 = vmatprep.subr.bf16.mxu0 %v5411_v18  ;;  %v1103_v58 = vrot.slane %v6686_v3, %v259_v27  ;;  %v1107_v18 = vrot.slane %v6686_v3, %v263_v60 }
 0x252   : > { %4735 = vmatprep.subr.bf16.mxu1 %v5412_v21 }
 0x254   : > { %4714 = vmatpush3.bf16.msra.mxu0 %v5413_v39 }
 0x255   : > { %4736 = vmatpush3.bf16.msra.mxu1 %v5414_v59  ;;  %4715 = vmatprep.subr.bf16.mxu0 %v5415_v48 }
 0x256   : > { %4737 = vmatprep.subr.bf16.mxu1 %v5416_v61 }
 0x258   : > { %4716 = vmatpush3.bf16.msra.mxu0 %v5417_v63 }
 0x259   : > { %4738 = vmatpush3.bf16.msra.mxu1 %v5418_v1  ;;  %4717 = vmatprep.subr.bf16.mxu0 %v5419_v2 }
 0x25a   : > { %4739 = vmatprep.subr.bf16.mxu1 %v5420_v4 }
 0x25c   : > { %4718 = vmatpush3.bf16.msra.mxu0 %v5421_v5 }
 0x25d   : > { %4740 = vmatpush3.bf16.msra.mxu1 %v5422_v6  ;;  %4719 = vmatprep.subr.bf16.mxu0 %v5423_v8 }
 0x25e   : > { %4741 = vmatprep.subr.bf16.mxu1 %v5424_v10 }
 0x260   : > { %4720 = vmatpush3.bf16.msra.mxu0 %v5425_v11 }
 0x261   : > { %4742 = vmatpush3.bf16.msra.mxu1 %v5426_v12  ;;  %4721 = vmatprep.subr.bf16.mxu0 %v5427_v16 }
 0x262   : > { %4743 = vmatprep.subr.bf16.mxu1 %v5428_v13 }
 0x264   : > { %4722 = vmatpush3.bf16.msra.mxu0 %v5429_v15 }
 0x265   : > { %4744 = vmatpush3.bf16.msra.mxu1 %v5430_v20  ;;  %4723 = vmatprep.subr.bf16.mxu0 %v5431_v49 }
 0x266   : > { %4745 = vmatprep.subr.bf16.mxu1 %v5432_v22 }
 0x268   : > { %4724 = vmatpush3.bf16.msra.mxu0 %v5433_v17 }
 0x269   : > { %4746 = vmatpush3.bf16.msra.mxu1 %v5434_v45 }
 0x26b   : > { %v3703_v26 = vpop.f32.mrf.mxu0  ;;  %4028 = vmatmul.mubr.bf16.vlgmr.msra.gmra.mxu0 %v6110_v62 }
 0x26c   : > { %v3704_v28 = vadd.f32 %v3703_v26, %v3663_v47  ;;  %v3744_v29 = vpop.f32.mrf.mxu1  ;;  %4068 = vmatmul.mubr.bf16.vlgmr.msra.gmra.mxu1 %v6115_v0 }
 0x26d   : > { %v3705_v54 = vpop.f32.mrf.mxu0 }
 0x26e   : > { %v3745_v31 = vadd.f32 %v3744_v29, %v3704_v28  ;;  %v3706_v32 = vadd.f32 %v3705_v54, %v3665_v50  ;;  %v3746_v7 = vpop.f32.mrf.mxu1  ;;  %v1111_v28 = vrot.slane %v6686_v3, %v267_v30 }
 0x26f   : > { %v3707_v33 = vpop.f32.mrf.mxu0 }
 0x270   : > { %v4077_v43 = vmul.f32 0.5, %v3745_v31  ;;  %v3747_v34 = vadd.f32 %v3746_v7, %v3706_v32  ;;  %v3748_v35 = vpop.f32.mrf.mxu1 }
 0x271   : > { %v3708_v9 = vpop.f32.mrf.mxu0 }
 0x272   : > { %5439 = vtanh.f32 %v4077_v43  ;;  %v4078_v36 = vmul.f32 0.5, %v3747_v34  ;;  %v3749_v62 = vpop.f32.mrf.mxu1 }
 0x274   : > { %5441 = vtanh.f32 %v4078_v36 }
 0x27f   : > { %v5440_v46 = vpop.eup %5439 }
 0x280   : > { %v4091_v37 = vmul.f32 0.5, %v5440_v46 }
 0x281   : > { %v5442_v38 = vpop.eup %5441 }
 0x282   : > { %v4098_v40 = vadd.f32 0.5, %v4091_v37  ;;  %v4092_v0 = vmul.f32 0.5, %v5442_v38 }
 0x284   : > { %4105 = vst [vmem:[%s6813_s14 + $0x10] sm:$0xff] %v4098_v40  ;;  %v4099_v44 = vadd.f32 0.5, %v4092_v0 }
 0x286   : > { %4106 = vst [vmem:[%s6813_s14 + $0x18] sm:$0xff] %v4099_v44 }
 0x2ab   : > { %v3785_v41 = vpop.f32.mrf.mxu0 }
 0x2ac   : > { %v3826_v14 = vpop.f32.mrf.mxu1  ;;  %v3786_v21 = vadd.f32 %v3785_v41, %v1103_v58 }
 0x2ad   : > { %v3787_v51 = vpop.f32.mrf.mxu0 }
 0x2ae   : > { %v3828_v52 = vpop.f32.mrf.mxu1  ;;  %v3788_v39 = vadd.f32 %v3787_v51, %v1107_v18  ;;  %v3827_v59 = vadd.f32 %v3826_v14, %v3786_v21 }
 0x2af   : > { %v3789_v53 = vpop.f32.mrf.mxu0 }
 0x2b0   : > { %v3830_v55 = vpop.f32.mrf.mxu1  ;;  %v3829_v61 = vadd.f32 %v3828_v52, %v3788_v39 }
 0x2b1   : > { %v3790_v56 = vpop.f32.mrf.mxu0 }
 0x2b2   : > { %v3831_v57 = vpop.f32.mrf.mxu1 }
 0x2eb   : > { %v3867_v48 = vpop.f32.mrf.mxu0 }
 0x2ec   : > { %v3868_v63 = vadd.f32 %v3867_v48, %v3827_v59  ;;  %v3908_v1 = vpop.f32.mrf.mxu1 }
 0x2ed   : > { %v3869_v2 = vpop.f32.mrf.mxu0 }
 0x2ee   : > { %v3909_v4 = vadd.f32 %v3908_v1, %v3868_v63  ;;  %v3870_v5 = vadd.f32 %v3869_v2, %v3829_v61  ;;  %v3910_v6 = vpop.f32.mrf.mxu1 }
 0x2ef   : > { %v3871_v8 = vpop.f32.mrf.mxu0 }
 0x2f0   : > { %v4079_v10 = vmul.f32 0.5, %v3909_v4  ;;  %v3911_v27 = vadd.f32 %v3910_v6, %v3870_v5  ;;  %v3912_v11 = vpop.f32.mrf.mxu1 }
 0x2f1   : > { %v3872_v12 = vpop.f32.mrf.mxu0 }
 0x2f2   : > { %5443 = vtanh.f32 %v4079_v10  ;;  %v4080_v60 = vmul.f32 0.5, %v3911_v27  ;;  %v3913_v16 = vpop.f32.mrf.mxu1 }
 0x2f4   : > { %5445 = vtanh.f32 %v4080_v60 }
 0x2ff   : > { %v5444_v13 = vpop.eup %5443 }
 0x300   : > { %v4093_v15 = vmul.f32 0.5, %v5444_v13 }
 0x301   : > { %v5446_v20 = vpop.eup %5445 }
 0x302   : > { %v4100_v49 = vadd.f32 0.5, %v4093_v15  ;;  %v4094_v19 = vmul.f32 0.5, %v5446_v20 }
 0x304   : > { %4107 = vst [vmem:[%s6813_s14 + $0x20] sm:$0xff] %v4100_v49  ;;  %v4101_v22 = vadd.f32 0.5, %v4094_v19 }
 0x306   : > { %4108 = vst [vmem:[%s6813_s14 + $0x28] sm:$0xff] %v4101_v22 }
 0x30b   : > { %v4681_v23 = vpop.f32.mrf.mxu0 }
 0x30c   : > { %v4703_v17 = vpop.f32.mrf.mxu1 }
 0x30d   : > { %v4682_v45 = vpop.f32.mrf.mxu0 }
 0x30e   : > { %v4704_v24 = vpop.f32.mrf.mxu1  ;;  %v4683_v29 = vadd.f32 %v4682_v45, %v4681_v23 }
 0x30f   : > { %v4684_v25 = vpop.f32.mrf.mxu0  ;;  %v4705_v32 = vadd.f32 %v4704_v24, %v4703_v17 }
 0x310   : > { %v4706_v47 = vpop.f32.mrf.mxu1  ;;  %v3950_v54 = vadd.f32 %v4683_v29, %v1111_v28 }
 0x311   : > { %v4685_v26 = vpop.f32.mrf.mxu0 }
 0x312   : > { %v4707_v50 = vpop.f32.mrf.mxu1  ;;  %v3990_v43 = vadd.f32 %v4705_v32, %v3950_v54 }
 0x32b   : > { %v4725_v31 = vpop.f32.mrf.mxu0 }
 0x32c   : > { %v4747_v7 = vpop.f32.mrf.mxu1 }
 0x32d   : > { %v4726_v33 = vpop.f32.mrf.mxu0 }
 0x32e   : > { %v4727_v34 = vadd.f32 %v4726_v33, %v4725_v31  ;;  %v4748_v35 = vpop.f32.mrf.mxu1 }
 0x32f   : > { %v4728_v9 = vpop.f32.mrf.mxu0  ;;  %v4749_v62 = vadd.f32 %v4748_v35, %v4747_v7 }
 0x330   : > { %v4030_v36 = vadd.f32 %v4727_v34, %v3990_v43  ;;  %v4750_v46 = vpop.f32.mrf.mxu1 }
 0x331   : > { %v4729_v42 = vpop.f32.mrf.mxu0 }
 0x332   : > { %v4070_v37 = vadd.f32 %v4749_v62, %v4030_v36  ;;  %v4751_v30 = vpop.f32.mrf.mxu1 }
 0x334   : > { %v4081_v3 = vmul.f32 0.5, %v4070_v37 }
 0x336   : > { %5447 = vtanh.f32 %v4081_v3 }
 0x343   : > { %v5448_v38 = vpop.eup %5447 }
 0x344   : > { %v4095_v40 = vmul.f32 0.5, %v5448_v38 }
 0x346   : > { %v4102_v0 = vadd.f32 0.5, %v4095_v40 }
 0x348   : > { %4110 = vst.msk [vmem:[%s6813_s14 + $0x30] sm:$0xff] %vm4109_vm2, %v4102_v0 }
 0x349   : > { %5462 = shalt.err (!%p5459_p3)
}
 0x34a   : > { %s5463_s8 = scalar_lea.hbm %s4124_s25, 896  ;;  %s5467_s9 = scalar_lea.hbm %s7194_s5, 1792 }
 0x34b   : > { %p5464_p4 = scmp.ne.s32.totalorder %s4124_s25, %s5463_s8  ;;  %p5468_p9 = scmp.lt.s32.totalorder %s4124_s25, %s7194_s5 }
 0x34c   : > { %p5469_p10 = scmp.lt.s32.totalorder %s5467_s9, %s5463_s8 }
 0x34d   : > { %p5465_p7 = pnand %p5464_p4, %p5581_p5 }
 0x34e   : > { %p5470_p11 = por %p5469_p10, %p5468_p9 }
 0x34f   : > { %p5466_p8 = pneg %p5465_p7 }
 0x351   : > { %p5471_p12 = pnand %p5470_p11, %p5466_p8 }
 0x353   : > { %5474 = shalt.err (!%p5471_p12)
}
 0x354   : > { %4755 = dma.vmem_to_hbm [thread:$0]  (%p5581_p5), %s4127_s16, 896, %s4124_s25, %s4112_s26  }
 0x355 PF: > { %p4761_p13 = scmp.ge.s32.totalorder %s5509_s21, 2  ;;  %s4138_s12 = sand.u32 1, %s5497_s18  }
 0x356   : > { %s4139_s15 = scalar_lea.sflag [#allocation3], %s4138_s12 }
 0x357   : > { %p4758_p0 = pnand %p4761_p13, %p5585_p6 }
 0x359   : > { %p4759_p1 = pneg %p4758_p0 }
 0x35b   : > { %5492 = dma.done.wait (%p4759_p1), %s4139_s15, 896  }
 0x35c   : > { %5494 = vsyncadd (%p4759_p1), %s4139_s15, 4294966400  ;;  %p15_p2 = scmp.ge.s32.totalorder %s5568_s24, 4   ;;  %s7197_s18 = smov %s5501_s19 }
 0x35d   : > { %s7198_s19 = smov %s5505_s20  ;;  %s7199_s20 = smov %s5579_s27 }
 0x35e   : > { %s7200_s21 = smov %s5568_s24  ;;  %17 = sbr.rel (!%p15_p2) target bundleno = 3 (0x3), region = 75 }
 0x363   :  { %4144 = vsyncpa [#allocation3], 1 }
 0x364   :  { %4146 = vsyncpa [#allocation3 + $0x1], 1 }

</bundles_post_ra>
